<compile_context>
chip_gen: v6e
topology: v6e:2x2x1
jax: 0.10.0
libtpu: 0.0.40
codegen_flags: <defaults>
</compile_context>

<pallas_src>
import math
import functools

import jax
import jax.numpy as jnp
from jax import lax
from jax.experimental import pallas as pl
from jax.experimental.pallas import tpu as pltpu


# ----------------------------------------------------------------------------
# Pallas kernel: full time loop on-chip (parameters resident in VMEM).
# ----------------------------------------------------------------------------
def snn_seq_kernel(x_ref,        # VMEM [S, I*T]  per-step flattened input windows
                   wff_ref,      # VMEM [I*T, O]  fused feedforward weights
                   fbeff_ref,    # VMEM [M, O]    fused feedback kernel (row M-1 = newest)
                   bias_ref,     # VMEM [1, O]
                   u_ref,        # VMEM [S, O]    U[0,1) randoms for Bernoulli
                   hist0_ref,    # VMEM [M, O]    initial spiking history
                   sig_ref,      # out  [S, O]    sigmoid(potential) per step
                   spk_ref,      # out  [S, O]    sampled spikes per step
                   hist_out_ref, # out  [M, O]    final spiking history
                   ff_ref):      # scratch VMEM [S, O]  hoisted feedforward potentials
    n_steps, n_out = u_ref.shape
    mem_len = hist0_ref.shape[0]

    # Hoisted feedforward contraction for ALL steps: one MXU matmul, bias folded.
    # x depends only on the inputs (not on the recurrence), so this is legal.
    ff_ref[...] = jnp.dot(x_ref[...], wff_ref[...],
                          preferred_element_type=jnp.float32,
                          precision=lax.Precision.HIGHEST) + bias_ref[...]

    fb_eff = fbeff_ref[...]                                              # [M, O] tiny
    # Hoisted iota masks (JAX does not CSE broadcast_in_dim inside the loop).
    last_row = lax.broadcasted_iota(jnp.int32, (mem_len, n_out), 0) == mem_len - 1
    row_ids = lax.broadcasted_iota(jnp.int32, (n_steps, n_out), 0)

    def step(t, carry):
        hist, sig_all, spk_all = carry
        ff_pot = ff_ref[pl.ds(t, 1), :]                                  # [1, O] vld
        # Feedback potential: elementwise multiply + sublane reduce (VPU/XLU).
        fb_pot = jnp.sum(hist * fb_eff, axis=0, keepdims=True)           # [1, O]
        sig = jax.nn.sigmoid(ff_pot + fb_pot)                            # [1, O] EUP
        spk = (u_ref[pl.ds(t, 1), :] < sig).astype(jnp.float32)          # [1, O]
        # Accumulate per-step rows in loop-carried values; store once after loop.
        step_mask = row_ids == t
        sig_all = jnp.where(step_mask, sig, sig_all)
        spk_all = jnp.where(step_mask, spk, spk_all)
        # update_spiking_history: shift rows up (drop oldest), append newest.
        hist = jnp.where(last_row, spk,
                         pltpu.roll(hist, shift=mem_len - 1, axis=0))
        return hist, sig_all, spk_all

    init = (hist0_ref[...],
            jnp.zeros((n_steps, n_out), jnp.float32),
            jnp.zeros((n_steps, n_out), jnp.float32))
    # Full unroll is fine for small static n_steps; use partial unroll / a time
    # grid when n_steps grows (see TODO at top).
    hist_final, sig_all, spk_all = lax.fori_loop(0, n_steps, step, init,
                                                 unroll=True)
    sig_ref[...] = sig_all
    spk_ref[...] = spk_all
    hist_out_ref[...] = hist_final


# ----------------------------------------------------------------------------
# Wrapper: constant-parameter fusion (done once per sequence) + pallas_call.
# ----------------------------------------------------------------------------
@functools.partial(jax.jit, static_argnames=("memory_length",))
def snn_forward_sequence(input_seq,        # [S, I, T]  per-step input-history windows
                         uniforms,         # [S, O]     U[0,1) randoms
                         spiking_history,  # [O, H]     initial history (H <= memory_length)
                         ff_filter,        # [tau_ff, Bff]
                         ff_weights,       # [O, I, Bff]
                         fb_filter,        # [tau_fb, Bfb]
                         fb_weights,       # [O, Bfb]
                         bias,             # [O]
                         memory_length):
    n_steps, n_inputs, T = input_seq.shape
    n_outputs = bias.shape[0]
    hi = lax.Precision.HIGHEST

    # flip(X,-1) @ F[:T]  ==  X @ flip(F[:T], 0), folded with the basis weights:
    #   Weff[(i,t), o] = sum_b ff_weights[o,i,b] * flip(ff_filter[:T],0)[t,b]
    ff_filt_flip = jnp.flip(ff_filter[:T].astype(jnp.float32), axis=0)           # [T, Bff]
    w_eff = jnp.einsum("oib,tb->ito", ff_weights.astype(jnp.float32),
                       ff_filt_flip, precision=hi)
    w_eff = w_eff.reshape(n_inputs * T, n_outputs)                               # [I*T, O]

    # Feedback kernel aligned with time-major history rows (row M-1 = newest).
    fb_eff = jnp.einsum("ob,hb->ho", fb_weights.astype(jnp.float32),
                        fb_filter[:memory_length].astype(jnp.float32),
                        precision=hi)                                            # [M, O]
    fb_eff_flip = jnp.flip(fb_eff, axis=0)

    bias_row = bias.astype(jnp.float32)[None, :]                                 # [1, O]

    # Fixed-length, time-major history, zero-padded on the "old" side (identical
    # to the PyTorch growing history: extra filter taps hit zeros).
    H = spiking_history.shape[-1]
    keep = min(H, memory_length)
    hist0 = jnp.zeros((memory_length, n_outputs), jnp.float32)
    hist0 = hist0.at[memory_length - keep:, :].set(
        spiking_history.astype(jnp.float32)[:, -keep:].T)

    x_flat = input_seq.astype(jnp.float32).reshape(n_steps, n_inputs * T)

    vmem = pl.BlockSpec(memory_space=pltpu.MemorySpace.VMEM)
    sig_seq, spk_seq, hist_out = pl.pallas_call(
        snn_seq_kernel,
        out_shape=(jax.ShapeDtypeStruct((n_steps, n_outputs), jnp.float32),
                   jax.ShapeDtypeStruct((n_steps, n_outputs), jnp.float32),
                   jax.ShapeDtypeStruct((memory_length, n_outputs), jnp.float32)),
        in_specs=[vmem] * 6,
        out_specs=(vmem, vmem, vmem),
        scratch_shapes=[pltpu.VMEM((n_steps, n_outputs), jnp.float32)],
    )(x_flat, w_eff, fb_eff_flip, bias_row, uniforms.astype(jnp.float32), hist0)
    return sig_seq, spk_seq, hist_out


# ----------------------------------------------------------------------------
# Deterministic parameter / filter construction (mirrors __init__ shapes).
# ----------------------------------------------------------------------------
def raised_cosine_pillow_08(tau, n_basis, mu):
    # TODO(synk): original `filters.raised_cosine_pillow_08` module is unavailable;
    # deterministic raised-cosine surrogate with the same [n_basis, tau] shape.
    t = jnp.arange(tau, dtype=jnp.float32)
    centers = jnp.linspace(0.0, float(tau - 1), n_basis)
    width = float(tau) / max(n_basis, 1) * (1.0 + mu)
    phase = jnp.clip((t[None, :] - centers[:, None]) * jnp.pi / width, -jnp.pi, jnp.pi)
    return 0.5 * (1.0 + jnp.cos(phase))                     # [n_basis, tau]


def xavier_bound(n_outputs, n_inputs, n_basis_ff, gain=1.0):
    # matches torch _calculate_fan_in_and_fan_out on [O, I, Bff]
    fan_in = n_inputs * n_basis_ff
    fan_out = n_outputs * n_basis_ff
    std = gain * math.sqrt(2.0 / float(fan_in + fan_out))
    return math.sqrt(3.0) * std


if __name__ == "__main__":
    n_inputs, n_outputs = 32, 16
    n_basis_feedforward, n_basis_feedback = 2, 1
    tau_ff = tau_fb = 8
    mu = 0.5
    memory_length = max(tau_ff, tau_fb)
    n_steps = 16

    key = jax.random.PRNGKey(0)
    k_ff, k_fb, k_b, k_x, k_u = jax.random.split(key, 5)

    a = xavier_bound(n_outputs, n_inputs, n_basis_feedforward)
    ff_weights = jax.random.uniform(k_ff, (n_outputs, n_inputs, n_basis_feedforward),
                                    jnp.float32, minval=-a, maxval=a)
    fb_weights = jax.random.uniform(k_fb, (n_outputs, n_basis_feedback),
                                    jnp.float32, minval=-a, maxval=a)
    bias = jax.random.uniform(k_b, (n_outputs,), jnp.float32, minval=-a, maxval=a)

    ff_filter = raised_cosine_pillow_08(tau_ff, n_basis_feedforward, mu).T  # [tau_ff, Bff]
    fb_filter = raised_cosine_pillow_08(tau_fb, n_basis_feedback, mu).T     # [tau_fb, Bfb]

    # Per-step binary input-history windows, pre-drawn uniforms, initial history.
    input_seq = jax.random.bernoulli(k_x, 0.3, (n_steps, n_inputs, tau_ff)).astype(jnp.float32)
    uniforms = jax.random.uniform(k_u, (n_steps, n_outputs), jnp.float32)
    spiking_history0 = jnp.zeros((n_outputs, 2), jnp.float32)   # module's initial state

    sig_seq, spk_seq, hist_out = snn_forward_sequence(
        input_seq, uniforms, spiking_history0,
        ff_filter, ff_weights, fb_filter, fb_weights, bias,
        memory_length=memory_length)
    jax.block_until_ready((sig_seq, spk_seq, hist_out))

    # ---- pure-JAX reference using the ORIGINAL (un-fused) formulation ----
    # Teacher-forced with the kernel's own spikes so a near-threshold draw cannot
    # cascade into a bogus mismatch; validates potentials + history update per step.
    hi = jax.lax.Precision.HIGHEST
    hist = jnp.zeros((memory_length, n_outputs), jnp.float32)
    hist = hist.at[memory_length - 2:, :].set(spiking_history0.T)
    all_close = True
    for t in range(n_steps):
        x = input_seq[t]                                                  # [I, T]
        ff_trace = jnp.matmul(jnp.flip(x, -1), ff_filter[:tau_ff], precision=hi)
        ff_pot = jnp.sum(ff_weights * ff_trace[None], axis=(-1, -2))      # [O]
        hist_om = hist.T                                                  # [O, M]
        fb_trace = jnp.matmul(jnp.flip(hist_om, -1), fb_filter[:memory_length],
                              precision=hi)                               # [O, Bfb]
        fb_pot = jnp.sum(fb_weights * fb_trace, axis=-1)                  # [O]
        sig_ref_t = jax.nn.sigmoid(ff_pot + fb_pot + bias)
        all_close &= bool(jnp.allclose(sig_ref_t, sig_seq[t], atol=1e-4))
        hist = jnp.concatenate([hist[1:], spk_seq[t][None, :]], axis=0)

    assert sig_seq.shape == (n_steps, n_outputs)
    assert spk_seq.shape == (n_steps, n_outputs)
    assert hist_out.shape == (memory_length, n_outputs)
    assert all_close, "sigmoid(potential) mismatch vs un-fused reference"
    assert bool(jnp.all((spk_seq == 0.0) | (spk_seq == 1.0))), "non-binary spikes"
    assert bool(jnp.array_equal(spk_seq, (uniforms < sig_seq).astype(jnp.float32))), \
        "Bernoulli sampling mismatch"
    assert bool(jnp.array_equal(hist_out, hist)), "spiking-history update mismatch"

    print("KERNEL_OK")
</pallas_src>

<mosaic_0001>
module attributes {stable_mosaic.version = 11 : i64} {
  func.func @snn_seq_kernel(%arg0: memref<16x256xf32, #tpu.memory_space<vmem>>, %arg1: memref<256x16xf32, #tpu.memory_space<vmem>>, %arg2: memref<8x16xf32, #tpu.memory_space<vmem>>, %arg3: memref<1x16xf32, #tpu.memory_space<vmem>>, %arg4: memref<16x16xf32, #tpu.memory_space<vmem>>, %arg5: memref<8x16xf32, #tpu.memory_space<vmem>>, %arg6: memref<16x16xf32, #tpu.memory_space<vmem>>, %arg7: memref<16x16xf32, #tpu.memory_space<vmem>>, %arg8: memref<8x16xf32, #tpu.memory_space<vmem>>, %arg9: memref<16x16xf32, #tpu.memory_space<vmem>>) attributes {dimension_semantics = [], scalar_prefetch = 0 : i64, scratch_operands = 1 : i64, tpu.core_type = #tpu.core_type<tc>} {
    %c0 = arith.constant 0 : index
    %c0_0 = arith.constant 0 : index
    %0 = vector.load %arg0[%c0, %c0_0] : memref<16x256xf32, #tpu.memory_space<vmem>>, vector<16x256xf32>
    %c0_1 = arith.constant 0 : index
    %c0_2 = arith.constant 0 : index
    %1 = vector.load %arg1[%c0_1, %c0_2] : memref<256x16xf32, #tpu.memory_space<vmem>>, vector<256x16xf32>
    %cst = arith.constant dense<0.000000e+00> : vector<16x16xf32>
    %2 = tpu.matmul %0, %1, %cst {dimension_numbers = #tpu.dot_dimension_numbers<[1], [0], [0], [1], [0, 0, 1, 1], [], []>, precision = #tpu.contract_precision<fp32>} : vector<16x256xf32>, vector<256x16xf32>, vector<16x16xf32> -> vector<16x16xf32>
    %c0_3 = arith.constant 0 : index
    %c0_4 = arith.constant 0 : index
    %3 = vector.load %arg3[%c0_3, %c0_4] : memref<1x16xf32, #tpu.memory_space<vmem>>, vector<1x16xf32>
    %4 = vector.broadcast %3 : vector<1x16xf32> to vector<16x16xf32>
    %5 = arith.addf %2, %4 : vector<16x16xf32>
    %c0_5 = arith.constant 0 : index
    %c0_6 = arith.constant 0 : index
    %6 = vector.load %arg9[%c0_5, %c0_6] : memref<16x16xf32, #tpu.memory_space<vmem>>, vector<16x16xf32>
    tpu.vector_store %arg9[%c0_5, %c0_6], %5 {strides = array<i32>} : memref<16x16xf32, #tpu.memory_space<vmem>>, vector<16x16xf32>,
    %c0_7 = arith.constant 0 : index
    %c0_8 = arith.constant 0 : index
    %7 = vector.load %arg2[%c0_7, %c0_8] : memref<8x16xf32, #tpu.memory_space<vmem>>, vector<8x16xf32>
    %8 = tpu.iota {dimensions = array<i32: 0>} : vector<8x16xi32>
    %c7_i32 = arith.constant 7 : i32
    %9 = vector.broadcast %c7_i32 : i32 to vector<8x16xi32>
    %10 = arith.cmpi eq, %8, %9 : vector<8x16xi32>
    %11 = tpu.iota {dimensions = array<i32: 0>} : vector<16x16xi32>
    %c0_9 = arith.constant 0 : index
    %c0_10 = arith.constant 0 : index
    %12 = vector.load %arg5[%c0_9, %c0_10] : memref<8x16xf32, #tpu.memory_space<vmem>>, vector<8x16xf32>
    %cst_11 = arith.constant 0.000000e+00 : f32
    %13 = vector.broadcast %cst_11 : f32 to vector<16x16xf32>
    %cst_12 = arith.constant 0.000000e+00 : f32
    %14 = vector.broadcast %cst_12 : f32 to vector<16x16xf32>
    %c0_i32 = arith.constant 0 : i32
    %15 = arith.index_cast %c0_i32 : i32 to index
    %c0_13 = arith.constant 0 : index
    %16 = vector.load %arg9[%15, %c0_13] : memref<16x16xf32, #tpu.memory_space<vmem>>, vector<1x16xf32>
    %17 = arith.mulf %12, %7 : vector<8x16xf32>
    %cst_14 = arith.constant dense<0.000000e+00> : vector<16xf32>
    %18 = vector.multi_reduction <add>, %17, %cst_14 [0] : vector<8x16xf32> to vector<16xf32>
    %19 = vector.shape_cast %18 : vector<16xf32> to vector<1x16xf32>
    %20 = arith.addf %16, %19 : vector<1x16xf32>
    %21 = arith.negf %20 : vector<1x16xf32>
    %22 = math.exp %21 : vector<1x16xf32>
    %cst_15 = arith.constant 1.000000e+00 : f32
    %23 = vector.broadcast %cst_15 : f32 to vector<1x16xf32>
    %24 = arith.addf %23, %22 : vector<1x16xf32>
    %25 = arith.divf %23, %24 : vector<1x16xf32>
    %26 = arith.index_cast %c0_i32 : i32 to index
    %c0_16 = arith.constant 0 : index
    %27 = vector.load %arg4[%26, %c0_16] : memref<16x16xf32, #tpu.memory_space<vmem>>, vector<1x16xf32>
    %28 = arith.cmpf olt, %27, %25 : vector<1x16xf32>
    %29 = arith.extui %28 : vector<1x16xi1> to vector<1x16xi32>
    %30 = arith.sitofp %29 : vector<1x16xi32> to vector<1x16xf32>
    %31 = vector.broadcast %c0_i32 : i32 to vector<16x16xi32>
    %32 = arith.cmpi eq, %11, %31 : vector<16x16xi32>
    %33 = vector.shape_cast %25 : vector<1x16xf32> to vector<1x16xf32>
    %34 = vector.broadcast %33 : vector<1x16xf32> to vector<16x16xf32>
    %35 = arith.select %32, %34, %13 : vector<16x16xi1>, vector<16x16xf32>
    %36 = vector.shape_cast %30 : vector<1x16xf32> to vector<1x16xf32>
    %37 = vector.broadcast %36 : vector<1x16xf32> to vector<16x16xf32>
    %38 = arith.select %32, %37, %14 : vector<16x16xi1>, vector<16x16xf32>
    %c7_i32_17 = arith.constant 7 : i32
    %39 = tpu.dynamic_rotate %12 by %c7_i32_17 dim 0 : vector<8x16xf32>, i32 -> vector<8x16xf32>
    %40 = vector.shape_cast %30 : vector<1x16xf32> to vector<1x16xf32>
    %41 = vector.broadcast %40 : vector<1x16xf32> to vector<8x16xf32>
    %42 = arith.select %10, %41, %39 : vector<8x16xi1>, vector<8x16xf32>
    %c1_i32 = arith.constant 1 : i32
    %43 = arith.index_cast %c1_i32 : i32 to index
    %c0_18 = arith.constant 0 : index
    %44 = vector.load %arg9[%43, %c0_18] : memref<16x16xf32, #tpu.memory_space<vmem>>, vector<1x16xf32>
    %45 = arith.mulf %42, %7 : vector<8x16xf32>
    %cst_19 = arith.constant dense<0.000000e+00> : vector<16xf32>
    %46 = vector.multi_reduction <add>, %45, %cst_19 [0] : vector<8x16xf32> to vector<16xf32>
    %47 = vector.shape_cast %46 : vector<16xf32> to vector<1x16xf32>
    %48 = arith.addf %44, %47 : vector<1x16xf32>
    %49 = arith.negf %48 : vector<1x16xf32>
    %50 = math.exp %49 : vector<1x16xf32>
    %cst_20 = arith.constant 1.000000e+00 : f32
    %51 = vector.broadcast %cst_20 : f32 to vector<1x16xf32>
    %52 = arith.addf %51, %50 : vector<1x16xf32>
    %53 = arith.divf %51, %52 : vector<1x16xf32>
    %54 = arith.index_cast %c1_i32 : i32 to index
    %c0_21 = arith.constant 0 : index
    %55 = vector.load %arg4[%54, %c0_21] : memref<16x16xf32, #tpu.memory_space<vmem>>, vector<1x16xf32>
    %56 = arith.cmpf olt, %55, %53 : vector<1x16xf32>
    %57 = arith.extui %56 : vector<1x16xi1> to vector<1x16xi32>
    %58 = arith.sitofp %57 : vector<1x16xi32> to vector<1x16xf32>
    %59 = vector.broadcast %c1_i32 : i32 to vector<16x16xi32>
    %60 = arith.cmpi eq, %11, %59 : vector<16x16xi32>
    %61 = vector.shape_cast %53 : vector<1x16xf32> to vector<1x16xf32>
    %62 = vector.broadcast %61 : vector<1x16xf32> to vector<16x16xf32>
    %63 = arith.select %60, %62, %35 : vector<16x16xi1>, vector<16x16xf32>
    %64 = vector.shape_cast %58 : vector<1x16xf32> to vector<1x16xf32>
    %65 = vector.broadcast %64 : vector<1x16xf32> to vector<16x16xf32>
    %66 = arith.select %60, %65, %38 : vector<16x16xi1>, vector<16x16xf32>
    %c7_i32_22 = arith.constant 7 : i32
    %67 = tpu.dynamic_rotate %42 by %c7_i32_22 dim 0 : vector<8x16xf32>, i32 -> vector<8x16xf32>
    %68 = vector.shape_cast %58 : vector<1x16xf32> to vector<1x16xf32>
    %69 = vector.broadcast %68 : vector<1x16xf32> to vector<8x16xf32>
    %70 = arith.select %10, %69, %67 : vector<8x16xi1>, vector<8x16xf32>
    %c2_i32 = arith.constant 2 : i32
    %71 = arith.index_cast %c2_i32 : i32 to index
    %c0_23 = arith.constant 0 : index
    %72 = vector.load %arg9[%71, %c0_23] : memref<16x16xf32, #tpu.memory_space<vmem>>, vector<1x16xf32>
    %73 = arith.mulf %70, %7 : vector<8x16xf32>
    %cst_24 = arith.constant dense<0.000000e+00> : vector<16xf32>
    %74 = vector.multi_reduction <add>, %73, %cst_24 [0] : vector<8x16xf32> to vector<16xf32>
    %75 = vector.shape_cast %74 : vector<16xf32> to vector<1x16xf32>
    %76 = arith.addf %72, %75 : vector<1x16xf32>
    %77 = arith.negf %76 : vector<1x16xf32>
    %78 = math.exp %77 : vector<1x16xf32>
    %cst_25 = arith.constant 1.000000e+00 : f32
    %79 = vector.broadcast %cst_25 : f32 to vector<1x16xf32>
    %80 = arith.addf %79, %78 : vector<1x16xf32>
    %81 = arith.divf %79, %80 : vector<1x16xf32>
    %82 = arith.index_cast %c2_i32 : i32 to index
    %c0_26 = arith.constant 0 : index
    %83 = vector.load %arg4[%82, %c0_26] : memref<16x16xf32, #tpu.memory_space<vmem>>, vector<1x16xf32>
    %84 = arith.cmpf olt, %83, %81 : vector<1x16xf32>
    %85 = arith.extui %84 : vector<1x16xi1> to vector<1x16xi32>
    %86 = arith.sitofp %85 : vector<1x16xi32> to vector<1x16xf32>
    %87 = vector.broadcast %c2_i32 : i32 to vector<16x16xi32>
    %88 = arith.cmpi eq, %11, %87 : vector<16x16xi32>
    %89 = vector.shape_cast %81 : vector<1x16xf32> to vector<1x16xf32>
    %90 = vector.broadcast %89 : vector<1x16xf32> to vector<16x16xf32>
    %91 = arith.select %88, %90, %63 : vector<16x16xi1>, vector<16x16xf32>
    %92 = vector.shape_cast %86 : vector<1x16xf32> to vector<1x16xf32>
    %93 = vector.broadcast %92 : vector<1x16xf32> to vector<16x16xf32>
    %94 = arith.select %88, %93, %66 : vector<16x16xi1>, vector<16x16xf32>
    %c7_i32_27 = arith.constant 7 : i32
    %95 = tpu.dynamic_rotate %70 by %c7_i32_27 dim 0 : vector<8x16xf32>, i32 -> vector<8x16xf32>
    %96 = vector.shape_cast %86 : vector<1x16xf32> to vector<1x16xf32>
    %97 = vector.broadcast %96 : vector<1x16xf32> to vector<8x16xf32>
    %98 = arith.select %10, %97, %95 : vector<8x16xi1>, vector<8x16xf32>
    %c3_i32 = arith.constant 3 : i32
    %99 = arith.index_cast %c3_i32 : i32 to index
    %c0_28 = arith.constant 0 : index
    %100 = vector.load %arg9[%99, %c0_28] : memref<16x16xf32, #tpu.memory_space<vmem>>, vector<1x16xf32>
    %101 = arith.mulf %98, %7 : vector<8x16xf32>
    %cst_29 = arith.constant dense<0.000000e+00> : vector<16xf32>
    %102 = vector.multi_reduction <add>, %101, %cst_29 [0] : vector<8x16xf32> to vector<16xf32>
    %103 = vector.shape_cast %102 : vector<16xf32> to vector<1x16xf32>
    %104 = arith.addf %100, %103 : vector<1x16xf32>
    %105 = arith.negf %104 : vector<1x16xf32>
    %106 = math.exp %105 : vector<1x16xf32>
    %cst_30 = arith.constant 1.000000e+00 : f32
    %107 = vector.broadcast %cst_30 : f32 to vector<1x16xf32>
    %108 = arith.addf %107, %106 : vector<1x16xf32>
    %109 = arith.divf %107, %108 : vector<1x16xf32>
    %110 = arith.index_cast %c3_i32 : i32 to index
    %c0_31 = arith.constant 0 : index
    %111 = vector.load %arg4[%110, %c0_31] : memref<16x16xf32, #tpu.memory_space<vmem>>, vector<1x16xf32>
    %112 = arith.cmpf olt, %111, %109 : vector<1x16xf32>
    %113 = arith.extui %112 : vector<1x16xi1> to vector<1x16xi32>
    %114 = arith.sitofp %113 : vector<1x16xi32> to vector<1x16xf32>
    %115 = vector.broadcast %c3_i32 : i32 to vector<16x16xi32>
    %116 = arith.cmpi eq, %11, %115 : vector<16x16xi32>
    %117 = vector.shape_cast %109 : vector<1x16xf32> to vector<1x16xf32>
    %118 = vector.broadcast %117 : vector<1x16xf32> to vector<16x16xf32>
    %119 = arith.select %116, %118, %91 : vector<16x16xi1>, vector<16x16xf32>
    %120 = vector.shape_cast %114 : vector<1x16xf32> to vector<1x16xf32>
    %121 = vector.broadcast %120 : vector<1x16xf32> to vector<16x16xf32>
    %122 = arith.select %116, %121, %94 : vector<16x16xi1>, vector<16x16xf32>
    %c7_i32_32 = arith.constant 7 : i32
    %123 = tpu.dynamic_rotate %98 by %c7_i32_32 dim 0 : vector<8x16xf32>, i32 -> vector<8x16xf32>
    %124 = vector.shape_cast %114 : vector<1x16xf32> to vector<1x16xf32>
    %125 = vector.broadcast %124 : vector<1x16xf32> to vector<8x16xf32>
    %126 = arith.select %10, %125, %123 : vector<8x16xi1>, vector<8x16xf32>
    %c4_i32 = arith.constant 4 : i32
    %127 = arith.index_cast %c4_i32 : i32 to index
    %c0_33 = arith.constant 0 : index
    %128 = vector.load %arg9[%127, %c0_33] : memref<16x16xf32, #tpu.memory_space<vmem>>, vector<1x16xf32>
    %129 = arith.mulf %126, %7 : vector<8x16xf32>
    %cst_34 = arith.constant dense<0.000000e+00> : vector<16xf32>
    %130 = vector.multi_reduction <add>, %129, %cst_34 [0] : vector<8x16xf32> to vector<16xf32>
    %131 = vector.shape_cast %130 : vector<16xf32> to vector<1x16xf32>
    %132 = arith.addf %128, %131 : vector<1x16xf32>
    %133 = arith.negf %132 : vector<1x16xf32>
    %134 = math.exp %133 : vector<1x16xf32>
    %cst_35 = arith.constant 1.000000e+00 : f32
    %135 = vector.broadcast %cst_35 : f32 to vector<1x16xf32>
    %136 = arith.addf %135, %134 : vector<1x16xf32>
    %137 = arith.divf %135, %136 : vector<1x16xf32>
    %138 = arith.index_cast %c4_i32 : i32 to index
    %c0_36 = arith.constant 0 : index
    %139 = vector.load %arg4[%138, %c0_36] : memref<16x16xf32, #tpu.memory_space<vmem>>, vector<1x16xf32>
    %140 = arith.cmpf olt, %139, %137 : vector<1x16xf32>
    %141 = arith.extui %140 : vector<1x16xi1> to vector<1x16xi32>
    %142 = arith.sitofp %141 : vector<1x16xi32> to vector<1x16xf32>
    %143 = vector.broadcast %c4_i32 : i32 to vector<16x16xi32>
    %144 = arith.cmpi eq, %11, %143 : vector<16x16xi32>
    %145 = vector.shape_cast %137 : vector<1x16xf32> to vector<1x16xf32>
    %146 = vector.broadcast %145 : vector<1x16xf32> to vector<16x16xf32>
    %147 = arith.select %144, %146, %119 : vector<16x16xi1>, vector<16x16xf32>
    %148 = vector.shape_cast %142 : vector<1x16xf32> to vector<1x16xf32>
    %149 = vector.broadcast %148 : vector<1x16xf32> to vector<16x16xf32>
    %150 = arith.select %144, %149, %122 : vector<16x16xi1>, vector<16x16xf32>
    %c7_i32_37 = arith.constant 7 : i32
    %151 = tpu.dynamic_rotate %126 by %c7_i32_37 dim 0 : vector<8x16xf32>, i32 -> vector<8x16xf32>
    %152 = vector.shape_cast %142 : vector<1x16xf32> to vector<1x16xf32>
    %153 = vector.broadcast %152 : vector<1x16xf32> to vector<8x16xf32>
    %154 = arith.select %10, %153, %151 : vector<8x16xi1>, vector<8x16xf32>
    %c5_i32 = arith.constant 5 : i32
    %155 = arith.index_cast %c5_i32 : i32 to index
    %c0_38 = arith.constant 0 : index
    %156 = vector.load %arg9[%155, %c0_38] : memref<16x16xf32, #tpu.memory_space<vmem>>, vector<1x16xf32>
    %157 = arith.mulf %154, %7 : vector<8x16xf32>
    %cst_39 = arith.constant dense<0.000000e+00> : vector<16xf32>
    %158 = vector.multi_reduction <add>, %157, %cst_39 [0] : vector<8x16xf32> to vector<16xf32>
    %159 = vector.shape_cast %158 : vector<16xf32> to vector<1x16xf32>
    %160 = arith.addf %156, %159 : vector<1x16xf32>
    %161 = arith.negf %160 : vector<1x16xf32>
    %162 = math.exp %161 : vector<1x16xf32>
    %cst_40 = arith.constant 1.000000e+00 : f32
    %163 = vector.broadcast %cst_40 : f32 to vector<1x16xf32>
    %164 = arith.addf %163, %162 : vector<1x16xf32>
    %165 = arith.divf %163, %164 : vector<1x16xf32>
    %166 = arith.index_cast %c5_i32 : i32 to index
    %c0_41 = arith.constant 0 : index
    %167 = vector.load %arg4[%166, %c0_41] : memref<16x16xf32, #tpu.memory_space<vmem>>, vector<1x16xf32>
    %168 = arith.cmpf olt, %167, %165 : vector<1x16xf32>
    %169 = arith.extui %168 : vector<1x16xi1> to vector<1x16xi32>
    %170 = arith.sitofp %169 : vector<1x16xi32> to vector<1x16xf32>
    %171 = vector.broadcast %c5_i32 : i32 to vector<16x16xi32>
    %172 = arith.cmpi eq, %11, %171 : vector<16x16xi32>
    %173 = vector.shape_cast %165 : vector<1x16xf32> to vector<1x16xf32>
    %174 = vector.broadcast %173 : vector<1x16xf32> to vector<16x16xf32>
    %175 = arith.select %172, %174, %147 : vector<16x16xi1>, vector<16x16xf32>
    %176 = vector.shape_cast %170 : vector<1x16xf32> to vector<1x16xf32>
    %177 = vector.broadcast %176 : vector<1x16xf32> to vector<16x16xf32>
    %178 = arith.select %172, %177, %150 : vector<16x16xi1>, vector<16x16xf32>
    %c7_i32_42 = arith.constant 7 : i32
    %179 = tpu.dynamic_rotate %154 by %c7_i32_42 dim 0 : vector<8x16xf32>, i32 -> vector<8x16xf32>
    %180 = vector.shape_cast %170 : vector<1x16xf32> to vector<1x16xf32>
    %181 = vector.broadcast %180 : vector<1x16xf32> to vector<8x16xf32>
    %182 = arith.select %10, %181, %179 : vector<8x16xi1>, vector<8x16xf32>
    %c6_i32 = arith.constant 6 : i32
    %183 = arith.index_cast %c6_i32 : i32 to index
    %c0_43 = arith.constant 0 : index
    %184 = vector.load %arg9[%183, %c0_43] : memref<16x16xf32, #tpu.memory_space<vmem>>, vector<1x16xf32>
    %185 = arith.mulf %182, %7 : vector<8x16xf32>
    %cst_44 = arith.constant dense<0.000000e+00> : vector<16xf32>
    %186 = vector.multi_reduction <add>, %185, %cst_44 [0] : vector<8x16xf32> to vector<16xf32>
    %187 = vector.shape_cast %186 : vector<16xf32> to vector<1x16xf32>
    %188 = arith.addf %184, %187 : vector<1x16xf32>
    %189 = arith.negf %188 : vector<1x16xf32>
    %190 = math.exp %189 : vector<1x16xf32>
    %cst_45 = arith.constant 1.000000e+00 : f32
    %191 = vector.broadcast %cst_45 : f32 to vector<1x16xf32>
    %192 = arith.addf %191, %190 : vector<1x16xf32>
    %193 = arith.divf %191, %192 : vector<1x16xf32>
    %194 = arith.index_cast %c6_i32 : i32 to index
    %c0_46 = arith.constant 0 : index
    %195 = vector.load %arg4[%194, %c0_46] : memref<16x16xf32, #tpu.memory_space<vmem>>, vector<1x16xf32>
    %196 = arith.cmpf olt, %195, %193 : vector<1x16xf32>
    %197 = arith.extui %196 : vector<1x16xi1> to vector<1x16xi32>
    %198 = arith.sitofp %197 : vector<1x16xi32> to vector<1x16xf32>
    %199 = vector.broadcast %c6_i32 : i32 to vector<16x16xi32>
    %200 = arith.cmpi eq, %11, %199 : vector<16x16xi32>
    %201 = vector.shape_cast %193 : vector<1x16xf32> to vector<1x16xf32>
    %202 = vector.broadcast %201 : vector<1x16xf32> to vector<16x16xf32>
    %203 = arith.select %200, %202, %175 : vector<16x16xi1>, vector<16x16xf32>
    %204 = vector.shape_cast %198 : vector<1x16xf32> to vector<1x16xf32>
    %205 = vector.broadcast %204 : vector<1x16xf32> to vector<16x16xf32>
    %206 = arith.select %200, %205, %178 : vector<16x16xi1>, vector<16x16xf32>
    %c7_i32_47 = arith.constant 7 : i32
    %207 = tpu.dynamic_rotate %182 by %c7_i32_47 dim 0 : vector<8x16xf32>, i32 -> vector<8x16xf32>
    %208 = vector.shape_cast %198 : vector<1x16xf32> to vector<1x16xf32>
    %209 = vector.broadcast %208 : vector<1x16xf32> to vector<8x16xf32>
    %210 = arith.select %10, %209, %207 : vector<8x16xi1>, vector<8x16xf32>
    %c7_i32_48 = arith.constant 7 : i32
    %211 = arith.index_cast %c7_i32_48 : i32 to index
    %c0_49 = arith.constant 0 : index
    %212 = vector.load %arg9[%211, %c0_49] : memref<16x16xf32, #tpu.memory_space<vmem>>, vector<1x16xf32>
    %213 = arith.mulf %210, %7 : vector<8x16xf32>
    %cst_50 = arith.constant dense<0.000000e+00> : vector<16xf32>
    %214 = vector.multi_reduction <add>, %213, %cst_50 [0] : vector<8x16xf32> to vector<16xf32>
    %215 = vector.shape_cast %214 : vector<16xf32> to vector<1x16xf32>
    %216 = arith.addf %212, %215 : vector<1x16xf32>
    %217 = arith.negf %216 : vector<1x16xf32>
    %218 = math.exp %217 : vector<1x16xf32>
    %cst_51 = arith.constant 1.000000e+00 : f32
    %219 = vector.broadcast %cst_51 : f32 to vector<1x16xf32>
    %220 = arith.addf %219, %218 : vector<1x16xf32>
    %221 = arith.divf %219, %220 : vector<1x16xf32>
    %222 = arith.index_cast %c7_i32_48 : i32 to index
    %c0_52 = arith.constant 0 : index
    %223 = vector.load %arg4[%222, %c0_52] : memref<16x16xf32, #tpu.memory_space<vmem>>, vector<1x16xf32>
    %224 = arith.cmpf olt, %223, %221 : vector<1x16xf32>
    %225 = arith.extui %224 : vector<1x16xi1> to vector<1x16xi32>
    %226 = arith.sitofp %225 : vector<1x16xi32> to vector<1x16xf32>
    %227 = vector.broadcast %c7_i32_48 : i32 to vector<16x16xi32>
    %228 = arith.cmpi eq, %11, %227 : vector<16x16xi32>
    %229 = vector.shape_cast %221 : vector<1x16xf32> to vector<1x16xf32>
    %230 = vector.broadcast %229 : vector<1x16xf32> to vector<16x16xf32>
    %231 = arith.select %228, %230, %203 : vector<16x16xi1>, vector<16x16xf32>
    %232 = vector.shape_cast %226 : vector<1x16xf32> to vector<1x16xf32>
    %233 = vector.broadcast %232 : vector<1x16xf32> to vector<16x16xf32>
    %234 = arith.select %228, %233, %206 : vector<16x16xi1>, vector<16x16xf32>
    %c7_i32_53 = arith.constant 7 : i32
    %235 = tpu.dynamic_rotate %210 by %c7_i32_53 dim 0 : vector<8x16xf32>, i32 -> vector<8x16xf32>
    %236 = vector.shape_cast %226 : vector<1x16xf32> to vector<1x16xf32>
    %237 = vector.broadcast %236 : vector<1x16xf32> to vector<8x16xf32>
    %238 = arith.select %10, %237, %235 : vector<8x16xi1>, vector<8x16xf32>
    %c8_i32 = arith.constant 8 : i32
    %239 = arith.index_cast %c8_i32 : i32 to index
    %c0_54 = arith.constant 0 : index
    %240 = vector.load %arg9[%239, %c0_54] : memref<16x16xf32, #tpu.memory_space<vmem>>, vector<1x16xf32>
    %241 = arith.mulf %238, %7 : vector<8x16xf32>
    %cst_55 = arith.constant dense<0.000000e+00> : vector<16xf32>
    %242 = vector.multi_reduction <add>, %241, %cst_55 [0] : vector<8x16xf32> to vector<16xf32>
    %243 = vector.shape_cast %242 : vector<16xf32> to vector<1x16xf32>
    %244 = arith.addf %240, %243 : vector<1x16xf32>
    %245 = arith.negf %244 : vector<1x16xf32>
    %246 = math.exp %245 : vector<1x16xf32>
    %cst_56 = arith.constant 1.000000e+00 : f32
    %247 = vector.broadcast %cst_56 : f32 to vector<1x16xf32>
    %248 = arith.addf %247, %246 : vector<1x16xf32>
    %249 = arith.divf %247, %248 : vector<1x16xf32>
    %250 = arith.index_cast %c8_i32 : i32 to index
    %c0_57 = arith.constant 0 : index
    %251 = vector.load %arg4[%250, %c0_57] : memref<16x16xf32, #tpu.memory_space<vmem>>, vector<1x16xf32>
    %252 = arith.cmpf olt, %251, %249 : vector<1x16xf32>
    %253 = arith.extui %252 : vector<1x16xi1> to vector<1x16xi32>
    %254 = arith.sitofp %253 : vector<1x16xi32> to vector<1x16xf32>
    %255 = vector.broadcast %c8_i32 : i32 to vector<16x16xi32>
    %256 = arith.cmpi eq, %11, %255 : vector<16x16xi32>
    %257 = vector.shape_cast %249 : vector<1x16xf32> to vector<1x16xf32>
    %258 = vector.broadcast %257 : vector<1x16xf32> to vector<16x16xf32>
    %259 = arith.select %256, %258, %231 : vector<16x16xi1>, vector<16x16xf32>
    %260 = vector.shape_cast %254 : vector<1x16xf32> to vector<1x16xf32>
    %261 = vector.broadcast %260 : vector<1x16xf32> to vector<16x16xf32>
    %262 = arith.select %256, %261, %234 : vector<16x16xi1>, vector<16x16xf32>
    %c7_i32_58 = arith.constant 7 : i32
    %263 = tpu.dynamic_rotate %238 by %c7_i32_58 dim 0 : vector<8x16xf32>, i32 -> vector<8x16xf32>
    %264 = vector.shape_cast %254 : vector<1x16xf32> to vector<1x16xf32>
    %265 = vector.broadcast %264 : vector<1x16xf32> to vector<8x16xf32>
    %266 = arith.select %10, %265, %263 : vector<8x16xi1>, vector<8x16xf32>
    %c9_i32 = arith.constant 9 : i32
    %267 = arith.index_cast %c9_i32 : i32 to index
    %c0_59 = arith.constant 0 : index
    %268 = vector.load %arg9[%267, %c0_59] : memref<16x16xf32, #tpu.memory_space<vmem>>, vector<1x16xf32>
    %269 = arith.mulf %266, %7 : vector<8x16xf32>
    %cst_60 = arith.constant dense<0.000000e+00> : vector<16xf32>
    %270 = vector.multi_reduction <add>, %269, %cst_60 [0] : vector<8x16xf32> to vector<16xf32>
    %271 = vector.shape_cast %270 : vector<16xf32> to vector<1x16xf32>
    %272 = arith.addf %268, %271 : vector<1x16xf32>
    %273 = arith.negf %272 : vector<1x16xf32>
    %274 = math.exp %273 : vector<1x16xf32>
    %cst_61 = arith.constant 1.000000e+00 : f32
    %275 = vector.broadcast %cst_61 : f32 to vector<1x16xf32>
    %276 = arith.addf %275, %274 : vector<1x16xf32>
    %277 = arith.divf %275, %276 : vector<1x16xf32>
    %278 = arith.index_cast %c9_i32 : i32 to index
    %c0_62 = arith.constant 0 : index
    %279 = vector.load %arg4[%278, %c0_62] : memref<16x16xf32, #tpu.memory_space<vmem>>, vector<1x16xf32>
    %280 = arith.cmpf olt, %279, %277 : vector<1x16xf32>
    %281 = arith.extui %280 : vector<1x16xi1> to vector<1x16xi32>
    %282 = arith.sitofp %281 : vector<1x16xi32> to vector<1x16xf32>
    %283 = vector.broadcast %c9_i32 : i32 to vector<16x16xi32>
    %284 = arith.cmpi eq, %11, %283 : vector<16x16xi32>
    %285 = vector.shape_cast %277 : vector<1x16xf32> to vector<1x16xf32>
    %286 = vector.broadcast %285 : vector<1x16xf32> to vector<16x16xf32>
    %287 = arith.select %284, %286, %259 : vector<16x16xi1>, vector<16x16xf32>
    %288 = vector.shape_cast %282 : vector<1x16xf32> to vector<1x16xf32>
    %289 = vector.broadcast %288 : vector<1x16xf32> to vector<16x16xf32>
    %290 = arith.select %284, %289, %262 : vector<16x16xi1>, vector<16x16xf32>
    %c7_i32_63 = arith.constant 7 : i32
    %291 = tpu.dynamic_rotate %266 by %c7_i32_63 dim 0 : vector<8x16xf32>, i32 -> vector<8x16xf32>
    %292 = vector.shape_cast %282 : vector<1x16xf32> to vector<1x16xf32>
    %293 = vector.broadcast %292 : vector<1x16xf32> to vector<8x16xf32>
    %294 = arith.select %10, %293, %291 : vector<8x16xi1>, vector<8x16xf32>
    %c10_i32 = arith.constant 10 : i32
    %295 = arith.index_cast %c10_i32 : i32 to index
    %c0_64 = arith.constant 0 : index
    %296 = vector.load %arg9[%295, %c0_64] : memref<16x16xf32, #tpu.memory_space<vmem>>, vector<1x16xf32>
    %297 = arith.mulf %294, %7 : vector<8x16xf32>
    %cst_65 = arith.constant dense<0.000000e+00> : vector<16xf32>
    %298 = vector.multi_reduction <add>, %297, %cst_65 [0] : vector<8x16xf32> to vector<16xf32>
    %299 = vector.shape_cast %298 : vector<16xf32> to vector<1x16xf32>
    %300 = arith.addf %296, %299 : vector<1x16xf32>
    %301 = arith.negf %300 : vector<1x16xf32>
    %302 = math.exp %301 : vector<1x16xf32>
    %cst_66 = arith.constant 1.000000e+00 : f32
    %303 = vector.broadcast %cst_66 : f32 to vector<1x16xf32>
    %304 = arith.addf %303, %302 : vector<1x16xf32>
    %305 = arith.divf %303, %304 : vector<1x16xf32>
    %306 = arith.index_cast %c10_i32 : i32 to index
    %c0_67 = arith.constant 0 : index
    %307 = vector.load %arg4[%306, %c0_67] : memref<16x16xf32, #tpu.memory_space<vmem>>, vector<1x16xf32>
    %308 = arith.cmpf olt, %307, %305 : vector<1x16xf32>
    %309 = arith.extui %308 : vector<1x16xi1> to vector<1x16xi32>
    %310 = arith.sitofp %309 : vector<1x16xi32> to vector<1x16xf32>
    %311 = vector.broadcast %c10_i32 : i32 to vector<16x16xi32>
    %312 = arith.cmpi eq, %11, %311 : vector<16x16xi32>
    %313 = vector.shape_cast %305 : vector<1x16xf32> to vector<1x16xf32>
    %314 = vector.broadcast %313 : vector<1x16xf32> to vector<16x16xf32>
    %315 = arith.select %312, %314, %287 : vector<16x16xi1>, vector<16x16xf32>
    %316 = vector.shape_cast %310 : vector<1x16xf32> to vector<1x16xf32>
    %317 = vector.broadcast %316 : vector<1x16xf32> to vector<16x16xf32>
    %318 = arith.select %312, %317, %290 : vector<16x16xi1>, vector<16x16xf32>
    %c7_i32_68 = arith.constant 7 : i32
    %319 = tpu.dynamic_rotate %294 by %c7_i32_68 dim 0 : vector<8x16xf32>, i32 -> vector<8x16xf32>
    %320 = vector.shape_cast %310 : vector<1x16xf32> to vector<1x16xf32>
    %321 = vector.broadcast %320 : vector<1x16xf32> to vector<8x16xf32>
    %322 = arith.select %10, %321, %319 : vector<8x16xi1>, vector<8x16xf32>
    %c11_i32 = arith.constant 11 : i32
    %323 = arith.index_cast %c11_i32 : i32 to index
    %c0_69 = arith.constant 0 : index
    %324 = vector.load %arg9[%323, %c0_69] : memref<16x16xf32, #tpu.memory_space<vmem>>, vector<1x16xf32>
    %325 = arith.mulf %322, %7 : vector<8x16xf32>
    %cst_70 = arith.constant dense<0.000000e+00> : vector<16xf32>
    %326 = vector.multi_reduction <add>, %325, %cst_70 [0] : vector<8x16xf32> to vector<16xf32>
    %327 = vector.shape_cast %326 : vector<16xf32> to vector<1x16xf32>
    %328 = arith.addf %324, %327 : vector<1x16xf32>
    %329 = arith.negf %328 : vector<1x16xf32>
    %330 = math.exp %329 : vector<1x16xf32>
    %cst_71 = arith.constant 1.000000e+00 : f32
    %331 = vector.broadcast %cst_71 : f32 to vector<1x16xf32>
    %332 = arith.addf %331, %330 : vector<1x16xf32>
    %333 = arith.divf %331, %332 : vector<1x16xf32>
    %334 = arith.index_cast %c11_i32 : i32 to index
    %c0_72 = arith.constant 0 : index
    %335 = vector.load %arg4[%334, %c0_72] : memref<16x16xf32, #tpu.memory_space<vmem>>, vector<1x16xf32>
    %336 = arith.cmpf olt, %335, %333 : vector<1x16xf32>
    %337 = arith.extui %336 : vector<1x16xi1> to vector<1x16xi32>
    %338 = arith.sitofp %337 : vector<1x16xi32> to vector<1x16xf32>
    %339 = vector.broadcast %c11_i32 : i32 to vector<16x16xi32>
    %340 = arith.cmpi eq, %11, %339 : vector<16x16xi32>
    %341 = vector.shape_cast %333 : vector<1x16xf32> to vector<1x16xf32>
    %342 = vector.broadcast %341 : vector<1x16xf32> to vector<16x16xf32>
    %343 = arith.select %340, %342, %315 : vector<16x16xi1>, vector<16x16xf32>
    %344 = vector.shape_cast %338 : vector<1x16xf32> to vector<1x16xf32>
    %345 = vector.broadcast %344 : vector<1x16xf32> to vector<16x16xf32>
    %346 = arith.select %340, %345, %318 : vector<16x16xi1>, vector<16x16xf32>
    %c7_i32_73 = arith.constant 7 : i32
    %347 = tpu.dynamic_rotate %322 by %c7_i32_73 dim 0 : vector<8x16xf32>, i32 -> vector<8x16xf32>
    %348 = vector.shape_cast %338 : vector<1x16xf32> to vector<1x16xf32>
    %349 = vector.broadcast %348 : vector<1x16xf32> to vector<8x16xf32>
    %350 = arith.select %10, %349, %347 : vector<8x16xi1>, vector<8x16xf32>
    %c12_i32 = arith.constant 12 : i32
    %351 = arith.index_cast %c12_i32 : i32 to index
    %c0_74 = arith.constant 0 : index
    %352 = vector.load %arg9[%351, %c0_74] : memref<16x16xf32, #tpu.memory_space<vmem>>, vector<1x16xf32>
    %353 = arith.mulf %350, %7 : vector<8x16xf32>
    %cst_75 = arith.constant dense<0.000000e+00> : vector<16xf32>
    %354 = vector.multi_reduction <add>, %353, %cst_75 [0] : vector<8x16xf32> to vector<16xf32>
    %355 = vector.shape_cast %354 : vector<16xf32> to vector<1x16xf32>
    %356 = arith.addf %352, %355 : vector<1x16xf32>
    %357 = arith.negf %356 : vector<1x16xf32>
    %358 = math.exp %357 : vector<1x16xf32>
    %cst_76 = arith.constant 1.000000e+00 : f32
    %359 = vector.broadcast %cst_76 : f32 to vector<1x16xf32>
    %360 = arith.addf %359, %358 : vector<1x16xf32>
    %361 = arith.divf %359, %360 : vector<1x16xf32>
    %362 = arith.index_cast %c12_i32 : i32 to index
    %c0_77 = arith.constant 0 : index
    %363 = vector.load %arg4[%362, %c0_77] : memref<16x16xf32, #tpu.memory_space<vmem>>, vector<1x16xf32>
    %364 = arith.cmpf olt, %363, %361 : vector<1x16xf32>
    %365 = arith.extui %364 : vector<1x16xi1> to vector<1x16xi32>
    %366 = arith.sitofp %365 : vector<1x16xi32> to vector<1x16xf32>
    %367 = vector.broadcast %c12_i32 : i32 to vector<16x16xi32>
    %368 = arith.cmpi eq, %11, %367 : vector<16x16xi32>
    %369 = vector.shape_cast %361 : vector<1x16xf32> to vector<1x16xf32>
    %370 = vector.broadcast %369 : vector<1x16xf32> to vector<16x16xf32>
    %371 = arith.select %368, %370, %343 : vector<16x16xi1>, vector<16x16xf32>
    %372 = vector.shape_cast %366 : vector<1x16xf32> to vector<1x16xf32>
    %373 = vector.broadcast %372 : vector<1x16xf32> to vector<16x16xf32>
    %374 = arith.select %368, %373, %346 : vector<16x16xi1>, vector<16x16xf32>
    %c7_i32_78 = arith.constant 7 : i32
    %375 = tpu.dynamic_rotate %350 by %c7_i32_78 dim 0 : vector<8x16xf32>, i32 -> vector<8x16xf32>
    %376 = vector.shape_cast %366 : vector<1x16xf32> to vector<1x16xf32>
    %377 = vector.broadcast %376 : vector<1x16xf32> to vector<8x16xf32>
    %378 = arith.select %10, %377, %375 : vector<8x16xi1>, vector<8x16xf32>
    %c13_i32 = arith.constant 13 : i32
    %379 = arith.index_cast %c13_i32 : i32 to index
    %c0_79 = arith.constant 0 : index
    %380 = vector.load %arg9[%379, %c0_79] : memref<16x16xf32, #tpu.memory_space<vmem>>, vector<1x16xf32>
    %381 = arith.mulf %378, %7 : vector<8x16xf32>
    %cst_80 = arith.constant dense<0.000000e+00> : vector<16xf32>
    %382 = vector.multi_reduction <add>, %381, %cst_80 [0] : vector<8x16xf32> to vector<16xf32>
    %383 = vector.shape_cast %382 : vector<16xf32> to vector<1x16xf32>
    %384 = arith.addf %380, %383 : vector<1x16xf32>
    %385 = arith.negf %384 : vector<1x16xf32>
    %386 = math.exp %385 : vector<1x16xf32>
    %cst_81 = arith.constant 1.000000e+00 : f32
    %387 = vector.broadcast %cst_81 : f32 to vector<1x16xf32>
    %388 = arith.addf %387, %386 : vector<1x16xf32>
    %389 = arith.divf %387, %388 : vector<1x16xf32>
    %390 = arith.index_cast %c13_i32 : i32 to index
    %c0_82 = arith.constant 0 : index
    %391 = vector.load %arg4[%390, %c0_82] : memref<16x16xf32, #tpu.memory_space<vmem>>, vector<1x16xf32>
    %392 = arith.cmpf olt, %391, %389 : vector<1x16xf32>
    %393 = arith.extui %392 : vector<1x16xi1> to vector<1x16xi32>
    %394 = arith.sitofp %393 : vector<1x16xi32> to vector<1x16xf32>
    %395 = vector.broadcast %c13_i32 : i32 to vector<16x16xi32>
    %396 = arith.cmpi eq, %11, %395 : vector<16x16xi32>
    %397 = vector.shape_cast %389 : vector<1x16xf32> to vector<1x16xf32>
    %398 = vector.broadcast %397 : vector<1x16xf32> to vector<16x16xf32>
    %399 = arith.select %396, %398, %371 : vector<16x16xi1>, vector<16x16xf32>
    %400 = vector.shape_cast %394 : vector<1x16xf32> to vector<1x16xf32>
    %401 = vector.broadcast %400 : vector<1x16xf32> to vector<16x16xf32>
    %402 = arith.select %396, %401, %374 : vector<16x16xi1>, vector<16x16xf32>
    %c7_i32_83 = arith.constant 7 : i32
    %403 = tpu.dynamic_rotate %378 by %c7_i32_83 dim 0 : vector<8x16xf32>, i32 -> vector<8x16xf32>
    %404 = vector.shape_cast %394 : vector<1x16xf32> to vector<1x16xf32>
    %405 = vector.broadcast %404 : vector<1x16xf32> to vector<8x16xf32>
    %406 = arith.select %10, %405, %403 : vector<8x16xi1>, vector<8x16xf32>
    %c14_i32 = arith.constant 14 : i32
    %407 = arith.index_cast %c14_i32 : i32 to index
    %c0_84 = arith.constant 0 : index
    %408 = vector.load %arg9[%407, %c0_84] : memref<16x16xf32, #tpu.memory_space<vmem>>, vector<1x16xf32>
    %409 = arith.mulf %406, %7 : vector<8x16xf32>
    %cst_85 = arith.constant dense<0.000000e+00> : vector<16xf32>
    %410 = vector.multi_reduction <add>, %409, %cst_85 [0] : vector<8x16xf32> to vector<16xf32>
    %411 = vector.shape_cast %410 : vector<16xf32> to vector<1x16xf32>
    %412 = arith.addf %408, %411 : vector<1x16xf32>
    %413 = arith.negf %412 : vector<1x16xf32>
    %414 = math.exp %413 : vector<1x16xf32>
    %cst_86 = arith.constant 1.000000e+00 : f32
    %415 = vector.broadcast %cst_86 : f32 to vector<1x16xf32>
    %416 = arith.addf %415, %414 : vector<1x16xf32>
    %417 = arith.divf %415, %416 : vector<1x16xf32>
    %418 = arith.index_cast %c14_i32 : i32 to index
    %c0_87 = arith.constant 0 : index
    %419 = vector.load %arg4[%418, %c0_87] : memref<16x16xf32, #tpu.memory_space<vmem>>, vector<1x16xf32>
    %420 = arith.cmpf olt, %419, %417 : vector<1x16xf32>
    %421 = arith.extui %420 : vector<1x16xi1> to vector<1x16xi32>
    %422 = arith.sitofp %421 : vector<1x16xi32> to vector<1x16xf32>
    %423 = vector.broadcast %c14_i32 : i32 to vector<16x16xi32>
    %424 = arith.cmpi eq, %11, %423 : vector<16x16xi32>
    %425 = vector.shape_cast %417 : vector<1x16xf32> to vector<1x16xf32>
    %426 = vector.broadcast %425 : vector<1x16xf32> to vector<16x16xf32>
    %427 = arith.select %424, %426, %399 : vector<16x16xi1>, vector<16x16xf32>
    %428 = vector.shape_cast %422 : vector<1x16xf32> to vector<1x16xf32>
    %429 = vector.broadcast %428 : vector<1x16xf32> to vector<16x16xf32>
    %430 = arith.select %424, %429, %402 : vector<16x16xi1>, vector<16x16xf32>
    %c7_i32_88 = arith.constant 7 : i32
    %431 = tpu.dynamic_rotate %406 by %c7_i32_88 dim 0 : vector<8x16xf32>, i32 -> vector<8x16xf32>
    %432 = vector.shape_cast %422 : vector<1x16xf32> to vector<1x16xf32>
    %433 = vector.broadcast %432 : vector<1x16xf32> to vector<8x16xf32>
    %434 = arith.select %10, %433, %431 : vector<8x16xi1>, vector<8x16xf32>
    %c15_i32 = arith.constant 15 : i32
    %435 = arith.index_cast %c15_i32 : i32 to index
    %c0_89 = arith.constant 0 : index
    %436 = vector.load %arg9[%435, %c0_89] : memref<16x16xf32, #tpu.memory_space<vmem>>, vector<1x16xf32>
    %437 = arith.mulf %434, %7 : vector<8x16xf32>
    %cst_90 = arith.constant dense<0.000000e+00> : vector<16xf32>
    %438 = vector.multi_reduction <add>, %437, %cst_90 [0] : vector<8x16xf32> to vector<16xf32>
    %439 = vector.shape_cast %438 : vector<16xf32> to vector<1x16xf32>
    %440 = arith.addf %436, %439 : vector<1x16xf32>
    %441 = arith.negf %440 : vector<1x16xf32>
    %442 = math.exp %441 : vector<1x16xf32>
    %cst_91 = arith.constant 1.000000e+00 : f32
    %443 = vector.broadcast %cst_91 : f32 to vector<1x16xf32>
    %444 = arith.addf %443, %442 : vector<1x16xf32>
    %445 = arith.divf %443, %444 : vector<1x16xf32>
    %446 = arith.index_cast %c15_i32 : i32 to index
    %c0_92 = arith.constant 0 : index
    %447 = vector.load %arg4[%446, %c0_92] : memref<16x16xf32, #tpu.memory_space<vmem>>, vector<1x16xf32>
    %448 = arith.cmpf olt, %447, %445 : vector<1x16xf32>
    %449 = arith.extui %448 : vector<1x16xi1> to vector<1x16xi32>
    %450 = arith.sitofp %449 : vector<1x16xi32> to vector<1x16xf32>
    %451 = vector.broadcast %c15_i32 : i32 to vector<16x16xi32>
    %452 = arith.cmpi eq, %11, %451 : vector<16x16xi32>
    %453 = vector.shape_cast %445 : vector<1x16xf32> to vector<1x16xf32>
    %454 = vector.broadcast %453 : vector<1x16xf32> to vector<16x16xf32>
    %455 = arith.select %452, %454, %427 : vector<16x16xi1>, vector<16x16xf32>
    %456 = vector.shape_cast %450 : vector<1x16xf32> to vector<1x16xf32>
    %457 = vector.broadcast %456 : vector<1x16xf32> to vector<16x16xf32>
    %458 = arith.select %452, %457, %430 : vector<16x16xi1>, vector<16x16xf32>
    %c7_i32_93 = arith.constant 7 : i32
    %459 = tpu.dynamic_rotate %434 by %c7_i32_93 dim 0 : vector<8x16xf32>, i32 -> vector<8x16xf32>
    %460 = vector.shape_cast %450 : vector<1x16xf32> to vector<1x16xf32>
    %461 = vector.broadcast %460 : vector<1x16xf32> to vector<8x16xf32>
    %462 = arith.select %10, %461, %459 : vector<8x16xi1>, vector<8x16xf32>
    %c16_i32 = arith.constant 16 : i32
    %c0_94 = arith.constant 0 : index
    %c0_95 = arith.constant 0 : index
    %463 = vector.load %arg6[%c0_94, %c0_95] : memref<16x16xf32, #tpu.memory_space<vmem>>, vector<16x16xf32>
    tpu.vector_store %arg6[%c0_94, %c0_95], %455 {strides = array<i32>} : memref<16x16xf32, #tpu.memory_space<vmem>>, vector<16x16xf32>,
    %c0_96 = arith.constant 0 : index
    %c0_97 = arith.constant 0 : index
    %464 = vector.load %arg7[%c0_96, %c0_97] : memref<16x16xf32, #tpu.memory_space<vmem>>, vector<16x16xf32>
    tpu.vector_store %arg7[%c0_96, %c0_97], %458 {strides = array<i32>} : memref<16x16xf32, #tpu.memory_space<vmem>>, vector<16x16xf32>,
    %c0_98 = arith.constant 0 : index
    %c0_99 = arith.constant 0 : index
    %465 = vector.load %arg8[%c0_98, %c0_99] : memref<8x16xf32, #tpu.memory_space<vmem>>, vector<8x16xf32>
    tpu.vector_store %arg8[%c0_98, %c0_99], %462 {strides = array<i32>} : memref<8x16xf32, #tpu.memory_space<vmem>>, vector<8x16xf32>,
    return
  }
}

</mosaic_0001>

<bundles_post_ra>
// kernel: snn_forward_sequence.1
= control target key start
LH: loop header
LB: loop body
LE: loop exit
PB: predicated region body
PF: predicated region fallthrough
CT: control target
= control target key end

     0   :  { %14 = vsyncpa [#allocation4], 0  ;;  %s3047_s0 = inlined_call_operand.vmem [shape: f32[16,256], index: 0, kind: input, shape index: {}]   ;;  %s3048_s1 = inlined_call_operand.vmem [shape: f32[256,16], index: 1, kind: input, shape index: {}]   ;;  %s3049_s2 = inlined_call_operand.vmem [shape: f32[8,16], index: 2, kind: input, shape index: {}]   ;;  %s3050_s3 = inlined_call_operand.vmem [shape: f32[1,16], index: 3, kind: input, shape index: {}]   ;;  %s3051_s4 = inlined_call_operand.vmem [shape: f32[16,16], index: 4, kind: input, shape index: {}]   ;;  %s3052_s5 = inlined_call_operand.vmem [shape: f32[8,16], index: 5, kind: input, shape index: {}]   ;;  %s3053_s6 = inlined_call_operand.hbm [shape: f32[16,16], index: 6, kind: output, shape index: {0}]   ;;  %s3054_s7 = inlined_call_operand.hbm [shape: f32[16,16], index: 7, kind: output, shape index: {1}]   ;;  %s3055_s8 = inlined_call_operand.hbm [shape: f32[8,16], index: 8, kind: output, shape index: {2}]  }
   0x1   :  { %v63_v0 = vld [vmem:[%s3048_s1 + $0xf8] sm:$0xff]  ;;  %v62_v2 = vld [vmem:[%s3048_s1 + $0xf0] sm:$0xff]  ;;  %v61_v7 = vld [vmem:[%s3048_s1 + $0xe8] sm:$0xff] }
   0x2   :  { %v47_v1 = vld [vmem:[%s3048_s1 + $0x78] sm:$0xff]  ;;  %v2078_v3 = vand.u32 4294901760, %v63_v0  ;;  %v2082_v5 = vand.u32 4294901760, %v62_v2  ;;  %v46_v6 = vld [vmem:[%s3048_s1 + $0x70] sm:$0xff]  ;;  %v45_v8 = vld [vmem:[%s3048_s1 + $0x68] sm:$0xff]  ;;  %v2095_v10 = vand.u32 4294901760, %v61_v7 }
   0x3   :  { %v2080_v4 = vand.u32 4294901760, %v47_v1  ;;  %v2093_v9 = vand.u32 4294901760, %v46_v6  ;;  %v2097_v11 = vand.u32 4294901760, %v45_v8  ;;  %v60_v12 = vld [vmem:[%s3048_s1 + $0xe0] sm:$0xff]  ;;  %v59_v14 = vld [vmem:[%s3048_s1 + $0xd8] sm:$0xff]  ;;  %v2126_v20 = vld [vmem:[%s3048_s1 + $0xd0] sm:$0xff] }
   0x4   :  { %v44_v13 = vld [vmem:[%s3048_s1 + $0x60] sm:$0xff]  ;;  %1656 = vmatprep.subr.mxu0 %v2078_v3  ;;  %v2109_v15 = vand.u32 4294901760, %v60_v12  ;;  %v2113_v17 = vand.u32 4294901760, %v59_v14  ;;  %v2116_v18 = vsub.f32 %v63_v0, %v2078_v3  ;;  %v2121_v19 = vld [vmem:[%s3048_s1 + $0x58] sm:$0xff]  ;;  %v2131_v21 = vld [vmem:[%s3048_s1 + $0x50] sm:$0xff]  ;;  %v2141_v24 = vand.u32 4294901760, %v2126_v20 }
   0x5   :  { %v2111_v16 = vand.u32 4294901760, %v44_v13  ;;  %1657 = vmatpush3.msra.mxu0 %v2080_v4  ;;  %v2135_v22 = vand.u32 4294901760, %v2121_v19  ;;  %v2138_v23 = vsub.f32 %v47_v1, %v2080_v4  ;;  %v2144_v25 = vsub.f32 %v62_v2, %v2082_v5  ;;  %v2149_v26 = vld [vmem:[%s3048_s1 + $0xc8] sm:$0xff]  ;;  %v2159_v28 = vld [vmem:[%s3048_s1 + $0xc0] sm:$0xff]  ;;  %v2211_v46 = vld [vmem:[%s3048_s1 + $0xb8] sm:$0xff] }
   0x6   :  { %v2154_v27 = vld [vmem:[%s3048_s1 + $0x48] sm:$0xff]  ;;  %1658 = vmatprep.subr.mxu0 %v2082_v5  ;;  %v3069_v29 = vand.u32 4294901760, %v2116_v18  ;;  %v2164_v30 = vand.u32 4294901760, %v2131_v21  ;;  %v2167_v31 = vsub.f32 %v46_v6, %v2093_v9  ;;  %v2170_v32 = vand.u32 4294901760, %v2149_v26  ;;  %v2184_v37 = vld [vmem:[%s3048_s1 + $0x40] sm:$0xff]  ;;  %v2224_v51 = vld [vmem:[%s3048_s1 + $0x38] sm:$0xff] }
   0x7   :  { %1659 = vmatpush3.msra.mxu0 %v2093_v9  ;;  %v3068_v33 = vand.u32 4294901760, %v2138_v23  ;;  %v3066_v34 = vand.u32 4294901760, %v2144_v25  ;;  %v2176_v35 = vsub.f32 %v61_v7, %v2095_v10  ;;  %v2179_v36 = vand.u32 4294901760, %v2154_v27  ;;  %v2234_v56 = vld [vmem:[%s3048_s1 + $0xb0] sm:$0xff]  ;;  %v2264_v2 = vld [vmem:[%s3048_s1 + $0xa8] sm:$0xff] }
   0x8   :  { %3129 = vst [vmem:[#allocation10_spill] sm:$0xff] %v2164_v30  ;;  %3130 = vst [vmem:[#allocation11_spill] sm:$0xff] %v2170_v32  ;;  %1660 = vmatprep.subr.mxu0 %v2095_v10  ;;  %v314_v38 = vsub.f32 %v2116_v18, %v3069_v29  ;;  %v3065_v39 = vand.u32 4294901760, %v2167_v31  ;;  %v2192_v40 = vsub.f32 %v45_v8, %v2097_v11  ;;  %v2195_v41 = vand.u32 4294901760, %v2159_v28  ;;  %v2249_v61 = vld [vmem:[%s3048_s1 + $0x30] sm:$0xff] }
   0x9   :  { %3131 = vst [vmem:[#allocation12_spill] sm:$0xff] %v2179_v36  ;;  %1661 = vmatpush3.msra.mxu0 %v2097_v11  ;;  %v202_v42 = vsub.f32 %v2138_v23, %v3068_v33  ;;  %v321_v43 = vsub.f32 %v2144_v25, %v3066_v34  ;;  %v3063_v44 = vand.u32 4294901760, %v2176_v35  ;;  %v2206_v45 = vsub.f32 %v60_v12, %v2109_v15 }
   0xa   :  { %3132 = vst [vmem:[#allocation13_spill] sm:$0xff] %v2195_v41  ;;  %1662 = vmatprep.subr.mxu0 %v2109_v15  ;;  %v315_v47 = vand.u32 4294901760, %v314_v38  ;;  %v209_v48 = vsub.f32 %v2167_v31, %v3065_v39  ;;  %v3061_v49 = vand.u32 4294901760, %v2192_v40  ;;  %v2219_v50 = vand.u32 4294901760, %v2184_v37 }
   0xb   :  { %1663 = vmatpush3.msra.mxu0 %v2111_v16  ;;  %v203_v52 = vand.u32 4294901760, %v202_v42  ;;  %v322_v53 = vand.u32 4294901760, %v321_v43  ;;  %v328_v54 = vsub.f32 %v2176_v35, %v3063_v44  ;;  %v3060_v55 = vand.u32 4294901760, %v2206_v45 }
   0xc   :  { %3133 = vst [vmem:[#allocation14_spill] sm:$0xff] %v2219_v50  ;;  %1664 = vmatprep.subr.mxu0 %v2113_v17  ;;  %1694 = vmatprep.subr.mxu1 %v315_v47  ;;  %v210_v57 = vand.u32 4294901760, %v209_v48  ;;  %v216_v58 = vsub.f32 %v2192_v40, %v3061_v49  ;;  %v2241_v59 = vsub.f32 %v44_v13, %v2111_v16  ;;  %v2244_v60 = vand.u32 4294901760, %v2211_v46 }
   0xd   :  { %1665 = vmatpush3.msra.mxu0 %v2135_v22  ;;  %1695 = vmatpush3.msra.mxu1 %v203_v52  ;;  %v329_v62 = vand.u32 4294901760, %v328_v54  ;;  %v335_v63 = vsub.f32 %v2206_v45, %v3060_v55  ;;  %v2256_v0 = vsub.f32 %v59_v14, %v2113_v17  ;;  %v2259_v1 = vand.u32 4294901760, %v2224_v51 }
   0xe   :  { %3134 = vst [vmem:[#allocation15_spill] sm:$0xff] %v2244_v60 }
   0xf   :  { %3135 = vst [vmem:[#allocation16_spill] sm:$0xff] %v2259_v1 }
  0x10   :  { %15 = vsyncpa [#allocation6], 0  ;;  %1666 = vmatprep.subr.mxu0 %v2141_v24  ;;  %1696 = vmatprep.subr.mxu1 %v322_v53  ;;  %v217_v6 = vand.u32 4294901760, %v216_v58  ;;  %v3058_v7 = vand.u32 4294901760, %v2241_v59  ;;  %v2270_v8 = vsub.f32 %v2121_v19, %v2135_v22  ;;  %v2273_v12 = vand.u32 4294901760, %v2234_v56  ;;  %v2278_v13 = vld [vmem:[%s3048_s1 + $0x28] sm:$0xff] }
  0x11   :  { %1667 = vmatpush3.msra.mxu0 %v2164_v30  ;;  %1697 = vmatpush3.msra.mxu1 %v210_v57  ;;  %v336_v14 = vand.u32 4294901760, %v335_v63  ;;  %v3056_v38 = vand.u32 4294901760, %v2256_v0  ;;  %v2284_v42 = vsub.f32 %v2126_v20, %v2141_v24  ;;  %v2287_v19 = vand.u32 4294901760, %v2249_v61  ;;  %v2304_v20 = vld [vmem:[%s3048_s1 + $0xa0] sm:$0xff]  ;;  %v2357_v49 = vld [vmem:[%s3048_s1 + $0x18] sm:$0xff]  ;;  %v2373_v44 = vld [vmem:[%s3048_s1 + $0x90] sm:$0xff] }
  0x12   :  { %3136 = vst [vmem:[#allocation17_spill] sm:$0xff] %v2273_v12  ;;  %1668 = vmatprep.subr.mxu0 %v2170_v32  ;;  %1698 = vmatprep.subr.mxu1 %v329_v62  ;;  %v223_v43 = vsub.f32 %v2241_v59, %v3058_v7  ;;  %v3057_v47 = vand.u32 4294901760, %v2270_v8  ;;  %v2296_v48 = vsub.f32 %v2131_v21, %v2164_v30  ;;  %v2299_v52 = vand.u32 4294901760, %v2264_v2  ;;  %v2400_v33 = vld [vmem:[%s3048_s1 + $0x88] sm:$0xff]  ;;  %s2019_s17 = smov [#allocation3]   ;;  %s2020_s19 = smov [#allocation5]  }
  0x13   :  { %3137 = vst [vmem:[#allocation18_spill] sm:$0xff] %v2287_v19  ;;  %1669 = vmatpush3.msra.mxu0 %v2179_v36  ;;  %1699 = vmatpush3.msra.mxu1 %v217_v6  ;;  %v342_v53 = vsub.f32 %v2256_v0, %v3056_v38  ;;  %v3059_v54 = vand.u32 4294901760, %v2284_v42  ;;  %v2313_v21 = vsub.f32 %v2149_v26, %v2170_v32  ;;  %v2316_v57 = vand.u32 4294901760, %v2278_v13  ;;  %v2330_v26 = vld [vmem:[%s3048_s1 + $0x20] sm:$0xff]  ;;  %s1583_s18 = sshll.u32 %s2019_s17, 4  ;;  %s1595_s20 = sshll.u32 %s2020_s19, 4  ;;  %s1584_s18 = int_to_ptr.vmem [resolvable:$true] %s1583_s18  ;;  %s1596_s20 = int_to_ptr.vmem [resolvable:$true] %s1595_s20 }
  0x14   :  { %3138 = vst [vmem:[#allocation19_spill] sm:$0xff] %v2299_v52  ;;  %1670 = vmatprep.subr.mxu0 %v2195_v41  ;;  %1700 = vmatprep.subr.mxu1 %v336_v14  ;;  %v224_v58 = vand.u32 4294901760, %v223_v43  ;;  %v230_v62 = vsub.f32 %v2270_v8, %v3057_v47  ;;  %v3062_v63 = vand.u32 4294901760, %v2296_v48  ;;  %v2325_v6 = vsub.f32 %v2154_v27, %v2179_v36  ;;  %v2343_v27 = vld [vmem:[%s3048_s1 + $0x98] sm:$0xff]  ;;  %s2021_s21 = smov [#allocation7]   ;;  %p1959_p1 = scmp.lt.s32.totalorder %s1584_s18, %s1584_s18 }
  0x15   :  { %3139 = vst [vmem:[#allocation20_spill] sm:$0xff] %v2316_v57  ;;  %1671 = vmatpush3.msra.mxu0 %v2219_v50  ;;  %v343_v38 = vand.u32 4294901760, %v342_v53  ;;  %v349_v14 = vsub.f32 %v2284_v42, %v3059_v54  ;;  %v3064_v43 = vand.u32 4294901760, %v2313_v21  ;;  %v2338_v47 = vand.u32 4294901760, %v2304_v20  ;;  %s1608_s22 = sshll.u32 %s2021_s21, 4  ;;  %s3025_s22 = int_to_ptr.vmem [resolvable:$true] %s1608_s22 }
  0x16   :  { %1701 = vmatpush3.msra.mxu1 %v224_v58  ;;  %1672 = vmatprep.subr.mxu0 %v2244_v60  ;;  %v231_v7 = vand.u32 4294901760, %v230_v62  ;;  %v237_v53 = vsub.f32 %v2296_v48, %v3062_v63  ;;  %v3067_v54 = vand.u32 4294901760, %v2325_v6  ;;  %v2352_v55 = vsub.f32 %v2159_v28, %v2195_v41  ;;  %v28_v41 = vld [vmem:[%s3047_s0] sm:$0xff] }
  0x17   :  { %3140 = vst [vmem:[#allocation21_spill] sm:$0xff] %v2338_v47  ;;  %1702 = vmatprep.subr.mxu1 %v343_v38  ;;  %1673 = vmatpush3.msra.mxu0 %v2259_v1  ;;  %v350_v58 = vand.u32 4294901760, %v349_v14  ;;  %v356_v62 = vsub.f32 %v2313_v21, %v3064_v43  ;;  %v2364_v63 = vand.u32 4294901760, %v2330_v26  ;;  %v2368_v28 = vsub.f32 %v2184_v37, %v2219_v50  ;;  %v2386_v37 = vld [vmem:[%s3048_s1 + $0x10] sm:$0xff] }
  0x18   :  { %1703 = vmatpush3.msra.mxu1 %v231_v7  ;;  %1674 = vmatprep.subr.mxu0 %v2273_v12  ;;  %v238_v38 = vand.u32 4294901760, %v237_v53  ;;  %v244_v14 = vsub.f32 %v2325_v6, %v3067_v54  ;;  %v3072_v43 = vand.u32 4294901760, %v2352_v55  ;;  %v2381_v39 = vand.u32 4294901760, %v2343_v27 }
  0x19   :  { %3141 = vst [vmem:[#allocation22_spill] sm:$0xff] %v2364_v63  ;;  %1704 = vmatprep.subr.mxu1 %v350_v58  ;;  %1675 = vmatpush3.msra.mxu0 %v2287_v19  ;;  %v357_v7 = vand.u32 4294901760, %v356_v62  ;;  %v3073_v53 = vand.u32 4294901760, %v2368_v28  ;;  %v2392_v34 = vsub.f32 %v2211_v46, %v2244_v60  ;;  %v2395_v54 = vand.u32 4294901760, %v2357_v49 }
  0x1a   :  { %3142 = vst [vmem:[#allocation23_spill] sm:$0xff] %v2381_v39  ;;  %1705 = vmatpush3.msra.mxu1 %v238_v38  ;;  %1676 = vmatprep.subr.mxu0 %v2299_v52  ;;  %v245_v58 = vand.u32 4294901760, %v244_v14  ;;  %v363_v62 = vsub.f32 %v2352_v55, %v3072_v43  ;;  %v2408_v46 = vsub.f32 %v2224_v51, %v2259_v1  ;;  %v2411_v29 = vand.u32 4294901760, %v2373_v44  ;;  %v2428_v51 = vld [vmem:[%s3048_s1 + $0x8] sm:$0xff] }
  0x1b   :  { %3143 = vst [vmem:[#allocation24_spill] sm:$0xff] %v2395_v54  ;;  %1706 = vmatprep.subr.mxu1 %v357_v7  ;;  %1677 = vmatpush3.msra.mxu0 %v2316_v57  ;;  %v251_v38 = vsub.f32 %v2368_v28, %v3073_v53  ;;  %v2420_v60 = vsub.f32 %v2234_v56, %v2273_v12  ;;  %v2423_v43 = vand.u32 4294901760, %v2386_v37  ;;  %v2437_v56 = vand.u32 4294901760, %v2400_v33  ;;  %v2442_v12 = vld [vmem:[%s3048_s1 + $0x80] sm:$0xff] }
  0x1c   :  { %3144 = vst [vmem:[#allocation25_spill] sm:$0xff] %v2411_v29  ;;  %1707 = vmatpush3.msra.mxu1 %v245_v58  ;;  %1678 = vmatprep.subr.mxu0 %v2338_v47  ;;  %v364_v7 = vand.u32 4294901760, %v363_v62  ;;  %v2434_v14 = vsub.f32 %v2249_v61, %v2287_v19  ;;  %v3148_v1 = vand.u32 4294901760, %v2392_v34  ;;  %v2451_v61 = vsub.f32 %v2264_v2, %v2299_v52  ;;  %v2468_v2 = vld [vmem:[%s3048_s1] sm:$0xff] }
  0x1d   :  { %3145 = vst [vmem:[#allocation26_spill] sm:$0xff] %v2423_v43  ;;  %3147 = vst [vmem:[#allocation28_spill] sm:$0xff] %v2437_v56  ;;  %1679 = vmatpush3.msra.mxu0 %v2364_v63  ;;  %v252_v58 = vand.u32 4294901760, %v251_v38  ;;  %v3090_v53 = vand.u32 4294901760, %v2420_v60  ;;  %v3150_v19 = vand.u32 4294901760, %v2408_v46  ;;  %v2459_v38 = vand.u32 4294901760, %v2428_v51 }
  0x1e   :  { %3146 = vst [vmem:[#allocation27_spill] sm:$0xff] %v2434_v14  ;;  %v370_v62 = vsub.f32 %v2392_v34, %v3148_v1  ;;  %3149 = vst [vmem:[#allocation29_spill] sm:$0xff] %v2451_v61  ;;  %1708 = vmatprep.subr.mxu1 %v364_v7  ;;  %1680 = vmatprep.subr.mxu0 %v2381_v39  ;;  %v2463_v1 = vsub.f32 %v2278_v13, %v2316_v57  ;;  %v2476_v52 = vand.u32 4294901760, %v2442_v12  ;;  %v29_v13 = vld [vmem:[%s3047_s0 + $0x8] sm:$0xff]  ;;  %vm989_vm0 = vcmask 130048  }
  0x1f   :  { %v258_v50 = vsub.f32 %v2408_v46, %v3150_v19  ;;  %1709 = vmatpush3.msra.mxu1 %v252_v58  ;;  %1681 = vmatpush3.msra.mxu0 %v2395_v54  ;;  %v377_v19 = vsub.f32 %v2420_v60, %v3090_v53  ;;  %v3152_v58 = vand.u32 4294901760, %v2434_v14  ;;  %v2488_v53 = vsub.f32 %v2304_v20, %v2338_v47 }
  0x20   :  { %3151 = vst [vmem:[#allocation30_spill] sm:$0xff] %v2463_v1  ;;  %v371_v7 = vand.u32 4294901760, %v370_v62  ;;  %1682 = vmatprep.subr.mxu0 %v2411_v29  ;;  %v2502_v36 = vsub.f32 %v2330_v26, %v2364_v63  ;;  %v2517_v26 = vand.u32 4294901760, %v28_v41 }
  0x21   :  { %v259_v57 = vand.u32 4294901760, %v258_v50  ;;  %v265_v62 = vsub.f32 %v2434_v14, %v3152_v58  ;;  %v378_v32 = vand.u32 4294901760, %v377_v19  ;;  %1683 = vmatpush3.msra.mxu0 %v2423_v43  ;;  %v3153_v50 = vand.u32 4294901760, %v2451_v61 }
  0x22   :  { %1710 = vmatprep.subr.mxu1 %v371_v7  ;;  %v2498_v58 = vand.u32 4294901760, %v2468_v2  ;;  %3154 = vst [vmem:[#allocation31_spill] sm:$0xff] %v2502_v36  ;;  %1684 = vmatprep.subr.mxu0 %v2437_v56  ;;  %v3155_v7 = vand.u32 4294901760, %v2463_v1  ;;  %v3101_v47 = vand.u32 4294901760, %v2488_v53  ;;  %v2509_v14 = vand.u32 4294901760, %v29_v13  ;;  %3157 = vst [vmem:[#allocation33_spill] sm:$0xff] %v2517_v26 }
  0x23   :  { %v384_v30 = vsub.f32 %v2451_v61, %v3153_v50  ;;  %1711 = vmatpush3.msra.mxu1 %v259_v57  ;;  %v266_v20 = vand.u32 4294901760, %v265_v62  ;;  %1685 = vmatpush3.msra.mxu0 %v2459_v38  ;;  %v3102_v61 = vand.u32 4294901760, %v2502_v36  ;;  %v2515_v57 = vsub.f32 %v2343_v27, %v2381_v39 }
  0x24   :  { %v272_v19 = vsub.f32 %v2463_v1, %v3155_v7  ;;  %3156 = vst [vmem:[#allocation32_spill] sm:$0xff] %v2509_v14  ;;  %1712 = vmatprep.subr.mxu1 %v378_v32  ;;  %1686 = vmatprep.subr.mxu0 %v2476_v52  ;;  %v391_v7 = vsub.f32 %v2488_v53, %v3101_v47 }
  0x25   :  { %v385_v50 = vand.u32 4294901760, %v384_v30  ;;  %1713 = vmatpush3.msra.mxu1 %v266_v20  ;;  %v2524_v30 = vsub.f32 %v29_v13, %v2509_v14  ;;  %v2528_v32 = vsub.f32 %v2357_v49, %v2395_v54  ;;  %1687 = vmatpush3.msra.mxu0 %v2498_v58  ;;  %v279_v27 = vsub.f32 %v2502_v36, %v3102_v61 }
  0x26   :  { %v273_v62 = vand.u32 4294901760, %v272_v19  ;;  %v2536_v19 = vsub.f32 %v28_v41, %v2517_v26  ;;  %v2540_v13 = vsub.f32 %v2373_v44, %v2411_v29  ;;  %v392_v47 = vand.u32 4294901760, %v391_v7  ;;  %1732 = vmatprep.subr.mxu0 %v2116_v18  ;;  %423 = vmatprep.mubr.f32.mxu1 %v2509_v14 }
  0x27   :  { %3158 = vst [vmem:[#allocation34_spill] sm:$0xff] %v2528_v32  ;;  %1714 = vmatprep.subr.mxu1 %v385_v50  ;;  %v3107_v49 = vand.u32 4294901760, %v2524_v30  ;;  %v3110_v50 = vand.u32 4294901760, %v2528_v32  ;;  %v2547_v61 = vsub.f32 %v2386_v37, %v2423_v43  ;;  %v280_v20 = vand.u32 4294901760, %v279_v27 }
  0x28   :  { %1715 = vmatpush3.msra.mxu1 %v273_v62  ;;  %v3159_v41 = vand.u32 4294901760, %v2515_v57  ;;  %v3160_v62 = vand.u32 4294901760, %v2536_v19  ;;  %v3161_v14 = vand.u32 4294901760, %v2540_v13  ;;  %v2574_v43 = vsub.f32 %v2428_v51, %v2459_v38 }
  0x29   :  { %1716 = vmatprep.subr.mxu1 %v392_v47  ;;  %v170_v7 = vsub.f32 %v2524_v30, %v3107_v49  ;;  %v286_v37 = vsub.f32 %v2528_v32, %v3110_v50  ;;  %v3162_v29 = vand.u32 4294901760, %v2547_v61 }
  0x2a   :  { %v398_v54 = vsub.f32 %v2515_v57, %v3159_v41  ;;  %v2564_v41 = vsub.f32 %v2400_v33, %v2437_v56  ;;  %1717 = vmatpush3.msra.mxu1 %v280_v20  ;;  %v176_v47 = vsub.f32 %v2536_v19, %v3160_v62  ;;  %v405_v49 = vsub.f32 %v2540_v13, %v3161_v14 }
  0x2b   :  { %v171_v50 = vand.u32 4294901760, %v170_v7  ;;  %v287_v27 = vand.u32 4294901760, %v286_v37  ;;  %v293_v33 = vsub.f32 %v2547_v61, %v3162_v29  ;;  %v3117_v62 = vand.u32 4294901760, %v2574_v43 }
  0x2c   :  { %v399_v44 = vand.u32 4294901760, %v398_v54  ;;  %v3118_v54 = vand.u32 4294901760, %v2564_v41  ;;  %v177_v20 = vand.u32 4294901760, %v176_v47  ;;  %v406_v56 = vand.u32 4294901760, %v405_v49  ;;  %v31_v47 = vld [vmem:[%s3047_s0 + $0x18] sm:$0xff] }
  0x2d   :  { %v2583_v14 = vsub.f32 %v2442_v12, %v2476_v52  ;;  %172 = vmatprep.mubr.f32.mxu0 %v171_v50  ;;  %v294_v51 = vand.u32 4294901760, %v293_v33  ;;  %v2590_v29 = vsub.f32 %v2468_v2, %v2498_v58  ;;  %v300_v49 = vsub.f32 %v2574_v43, %v3117_v62  ;;  %v3169_v62 = vld [vmem:[#allocation13_spill] sm:$0xff] }
  0x2e   :  { %1718 = vmatprep.subr.mxu1 %v399_v44  ;;  %v412_v7 = vsub.f32 %v2564_v41, %v3118_v54  ;;  %178 = vmatmul.mubr.f32.vlgmr.msra.gmra.mxu0 %v177_v20  ;;  %v30_v20 = vld [vmem:[%s3047_s0 + $0x10] sm:$0xff] }
  0x2f   :  { %1719 = vmatpush3.msra.mxu1 %v287_v27  ;;  %3163 = vst [vmem:[#allocation35_spill] sm:$0xff] %v2590_v29  ;;  %v3116_v12 = vand.u32 4294901760, %v2583_v14  ;;  %1733 = vmatpush3.msra.mxu0 %v2138_v23  ;;  %v3115_v44 = vand.u32 4294901760, %v2590_v29  ;;  %v301_v37 = vand.u32 4294901760, %v300_v49 }
  0x30   :  { %1720 = vmatprep.subr.mxu1 %v406_v56  ;;  %v413_v50 = vand.u32 4294901760, %v412_v7  ;;  %1734 = vmatprep.subr.mxu0 %v2144_v25  ;;  %v2622_v7 = vand.u32 4294901760, %v30_v20 }
  0x31   :  { %1721 = vmatpush3.msra.mxu1 %v294_v51  ;;  %v419_v2 = vsub.f32 %v2583_v14, %v3116_v12  ;;  %1735 = vmatpush3.msra.mxu0 %v2167_v31  ;;  %v307_v56 = vsub.f32 %v2590_v29, %v3115_v44  ;;  %v2616_v51 = vand.u32 4294901760, %v31_v47  ;;  %v3168_v12 = vld [vmem:[#allocation12_spill] sm:$0xff] }
  0x32   :  { %1722 = vmatprep.subr.mxu1 %v413_v50  ;;  %1736 = vmatprep.subr.mxu0 %v2176_v35  ;;  %v2636_v50 = vsub.f32 %v30_v20, %v2622_v7  ;;  %v3167_v20 = vld [vmem:[#allocation11_spill] sm:$0xff] }
  0x33   :  { %1723 = vmatpush3.msra.mxu1 %v301_v37  ;;  %v420_v27 = vand.u32 4294901760, %v419_v2  ;;  %1737 = vmatpush3.msra.mxu0 %v2192_v40  ;;  %v308_v33 = vand.u32 4294901760, %v307_v56  ;;  %v2629_v49 = vsub.f32 %v31_v47, %v2616_v51  ;;  %v3164_v56 = vld [vmem:[#allocation27_spill] sm:$0xff]  ;;  %v3165_v47 = vld [vmem:[#allocation10_spill] sm:$0xff] }
  0x34   :  { %1738 = vmatprep.subr.mxu0 %v2206_v45  ;;  %v3123_v2 = vand.u32 4294901760, %v2636_v50 }
  0x35   :  { %1724 = vmatprep.subr.mxu1 %v420_v27  ;;  %1739 = vmatpush3.msra.mxu0 %v2241_v59  ;;  %v3119_v37 = vand.u32 4294901760, %v2629_v49 }
  0x36   :  { %1725 = vmatpush3.msra.mxu1 %v308_v33  ;;  %1740 = vmatprep.subr.mxu0 %v2256_v0  ;;  %v3166_v33 = vld [vmem:[#allocation29_spill] sm:$0xff]  ;;  %v191_v44 = vsub.f32 %v2636_v50, %v3123_v2 }
  0x37   :  { %425 = vmatmul.mubr.f32.vlgmr.msra.gmra.mxu1 %v2517_v26  ;;  %1770 = vmatprep.subr.mxu1 %v2078_v3  ;;  %v185_v27 = vsub.f32 %v2629_v49, %v3119_v37  ;;  %v3170_v37 = vld [vmem:[#allocation14_spill] sm:$0xff]  ;;  %v3171_v26 = vld [vmem:[#allocation15_spill] sm:$0xff]  ;;  %v3173_v2 = vld [vmem:[#allocation17_spill] sm:$0xff] }
  0x38   :  { %1741 = vmatpush3.msra.mxu0 %v2270_v8  ;;  %1771 = vmatpush3.msra.mxu1 %v2080_v4 }
  0x39   :  { %1742 = vmatprep.subr.mxu0 %v2284_v42  ;;  %1772 = vmatprep.subr.mxu1 %v2082_v5  ;;  %v186_v54 = vand.u32 4294901760, %v185_v27  ;;  %v3175_v27 = vld [vmem:[#allocation19_spill] sm:$0xff] }
  0x3a   :  { %1743 = vmatpush3.msra.mxu0 %v2296_v48  ;;  %1773 = vmatpush3.msra.mxu1 %v2093_v9 }
  0x3b   :  { %1744 = vmatprep.subr.mxu0 %v2313_v21  ;;  %1774 = vmatprep.subr.mxu1 %v2095_v10 }
  0x3c   :  { %1745 = vmatpush3.msra.mxu0 %v2325_v6  ;;  %1775 = vmatpush3.msra.mxu1 %v2097_v11 }
  0x3d   :  { %1746 = vmatprep.subr.mxu0 %v2352_v55  ;;  %1776 = vmatprep.subr.mxu1 %v2109_v15 }
  0x3e   :  { %1747 = vmatpush3.msra.mxu0 %v2368_v28  ;;  %1777 = vmatpush3.msra.mxu1 %v2111_v16 }
  0x3f   :  { %1748 = vmatprep.subr.mxu0 %v2392_v34  ;;  %1778 = vmatprep.subr.mxu1 %v2113_v17 }
  0x40   :  { %1749 = vmatpush3.msra.mxu0 %v2408_v46  ;;  %1779 = vmatpush3.msra.mxu1 %v2135_v22 }
  0x41   :  { %1750 = vmatprep.subr.mxu0 %v2420_v60  ;;  %1780 = vmatprep.subr.mxu1 %v2141_v24 }
  0x42   :  { %1751 = vmatpush3.msra.mxu0 %v3164_v56  ;;  %1781 = vmatpush3.msra.mxu1 %v3165_v47 }
  0x43   :  { %1752 = vmatprep.subr.mxu0 %v3166_v33  ;;  %1782 = vmatprep.subr.mxu1 %v3167_v20  ;;  %v3172_v20 = vld [vmem:[#allocation16_spill] sm:$0xff] }
  0x44   :  { %1753 = vmatpush3.msra.mxu0 %v2463_v1  ;;  %1783 = vmatpush3.msra.mxu1 %v3168_v12  ;;  %v192_v1 = vand.u32 4294901760, %v191_v44  ;;  %v3177_v44 = vld [vmem:[#allocation21_spill] sm:$0xff] }
  0x45   :  { %1754 = vmatprep.subr.mxu0 %v2488_v53  ;;  %1784 = vmatprep.subr.mxu1 %v3169_v62 }
  0x46   :  { %1755 = vmatpush3.msra.mxu0 %v2502_v36  ;;  %1785 = vmatpush3.msra.mxu1 %v3170_v37  ;;  %v3174_v36 = vld [vmem:[#allocation18_spill] sm:$0xff] }
  0x47   :  { %1756 = vmatprep.subr.mxu0 %v2515_v57  ;;  %1786 = vmatprep.subr.mxu1 %v3171_v26 }
  0x48   :  { %1757 = vmatpush3.msra.mxu0 %v2528_v32  ;;  %1787 = vmatpush3.msra.mxu1 %v3172_v20  ;;  %v3176_v32 = vld [vmem:[#allocation20_spill] sm:$0xff] }
  0x49   :  { %1758 = vmatprep.subr.mxu0 %v2540_v13  ;;  %1788 = vmatprep.subr.mxu1 %v3173_v2 }
  0x4a   :  { %187 = vmatprep.mubr.f32.mxu0 %v186_v54  ;;  %1759 = vmatpush3.msra.mxu0 %v2547_v61  ;;  %v3179_v54 = vld [vmem:[#allocation24_spill] sm:$0xff] }
  0x4b   :  { %1789 = vmatpush3.msra.mxu1 %v3174_v36  ;;  %193 = vmatmul.mubr.f32.gmra.mxu0 %v192_v1  ;;  %v3178_v1 = vand.u32 4294901760, %v2116_v18  ;;  %v3185_v18 = vld [vmem:[#allocation28_spill] sm:$0xff] }
  0x4c   :  { %1760 = vmatprep.subr.mxu0 %v2564_v41  ;;  %1790 = vmatprep.subr.mxu1 %v3175_v27 }
  0x4d   :  { %1761 = vmatpush3.msra.mxu0 %v2574_v43  ;;  %1791 = vmatpush3.msra.mxu1 %v3176_v32  ;;  %v3180_v32 = vand.u32 4294901760, %v2138_v23  ;;  %v3186_v23 = vand.u32 4294901760, %v2176_v35  ;;  %v3190_v35 = vand.u32 4294901760, %v2241_v59  ;;  %v3195_v59 = vand.u32 4294901760, %v2629_v49 }
  0x4e   :  { %1762 = vmatprep.subr.mxu0 %v2583_v14  ;;  %1792 = vmatprep.subr.mxu1 %v3177_v44  ;;  %v3181_v44 = vld [vmem:[#allocation25_spill] sm:$0xff] }
  0x4f   :  { %1763 = vmatpush3.msra.mxu0 %v2590_v29  ;;  %567 = vmatprep.mubr.f32.mxu0 %v2524_v30  ;;  %v3182_v29 = vand.u32 4294901760, %v2144_v25  ;;  %v3187_v25 = vand.u32 4294901760, %v2192_v40  ;;  %v3193_v40 = vand.u32 4294901760, %v2270_v8  ;;  %v3202_v8 = vand.u32 4294901760, %v2392_v34  ;;  %v3207_v34 = vld [vmem:[#allocation11_spill] sm:$0xff] }
  0x50   :  { %1793 = vmatpush3.msra.mxu1 %v2364_v63  ;;  %570 = vmatmul.mubr.f32.vlgmr.msra.gmra.mxu0 %v2536_v19  ;;  %v3183_v63 = vand.u32 4294901760, %v2167_v31  ;;  %v3188_v31 = vand.u32 4294901760, %v2206_v45  ;;  %v3194_v45 = vand.u32 4294901760, %v2284_v42  ;;  %v3213_v42 = vand.u32 4294901760, %v2515_v57  ;;  %v3220_v57 = vld [vmem:[#allocation20_spill] sm:$0xff] }
  0x51   :  { %1794 = vmatprep.subr.mxu1 %v2381_v39  ;;  %1808 = vmatprep.subr.mxu0 %v3178_v1  ;;  %v3184_v39 = vld [vmem:[#allocation26_spill] sm:$0xff] }
  0x52   :  { %1795 = vmatpush3.msra.mxu1 %v3179_v54  ;;  %1809 = vmatpush3.msra.mxu0 %v3180_v32  ;;  %v3191_v32 = vand.u32 4294901760, %v2536_v19  ;;  %v3222_v19 = vld [vmem:[#allocation21_spill] sm:$0xff] }
  0x53   :  { %430 = vmatprep.mubr.f32.mxu1 %v2616_v51  ;;  %1796 = vmatprep.subr.mxu1 %v3181_v44 }
  0x54   :  { %1810 = vmatprep.subr.mxu0 %v3182_v29  ;;  %432 = vmatmul.mubr.f32.gmra.mxu1 %v2622_v7  ;;  %v3192_v29 = vand.u32 4294901760, %v2256_v0  ;;  %v3198_v0 = vand.u32 4294901760, %v2313_v21 }
  0x55   :  { %1811 = vmatpush3.msra.mxu0 %v3183_v63  ;;  %1797 = vmatpush3.msra.mxu1 %v3184_v39  ;;  %v3189_v63 = vand.u32 4294901760, %v2524_v30  ;;  %v3196_v30 = vand.u32 4294901760, %v2296_v48  ;;  %v3214_v48 = vld [vmem:[#allocation34_spill] sm:$0xff] }
  0x56   :  { %576 = vmatprep.mubr.f32.mxu0 %v2629_v49  ;;  %1798 = vmatprep.subr.mxu1 %v3185_v18  ;;  %v3215_v21 = vand.u32 4294901760, %v3214_v48 }
  0x57   :  { %1812 = vmatprep.subr.mxu0 %v3186_v23  ;;  %579 = vmatmul.mubr.f32.gmra.mxu0 %v2636_v50 }
  0x58   :  { %1799 = vmatpush3.msra.mxu1 %v2459_v38  ;;  %1813 = vmatpush3.msra.mxu0 %v3187_v25 }
  0x59   :  { %1800 = vmatprep.subr.mxu1 %v2476_v52  ;;  %1814 = vmatprep.subr.mxu0 %v3188_v31 }
  0x5a   :  { %1801 = vmatpush3.msra.mxu1 %v2498_v58  ;;  %683 = vmatprep.mubr.f32.mxu1 %v3189_v63 }
  0x5b   :  { %1815 = vmatpush3.msra.mxu0 %v3190_v35  ;;  %687 = vmatmul.mubr.f32.vlgmr.msra.gmra.mxu1 %v3191_v32 }
  0x5c   :  { %1816 = vmatprep.subr.mxu0 %v3192_v29  ;;  %1846 = vmatprep.subr.mxu1 %v2078_v3  ;;  %v3197_v3 = vand.u32 4294901760, %v2636_v50 }
  0x5d   :  { %1817 = vmatpush3.msra.mxu0 %v3193_v40  ;;  %1847 = vmatpush3.msra.mxu1 %v2080_v4  ;;  %v3199_v4 = vand.u32 4294901760, %v2325_v6  ;;  %v3216_v6 = vand.u32 4294901760, %v2540_v13  ;;  %v3223_v13 = vld [vmem:[#allocation35_spill] sm:$0xff] }
  0x5e   :  { %1818 = vmatprep.subr.mxu0 %v3194_v45  ;;  %1848 = vmatprep.subr.mxu1 %v2082_v5  ;;  %v3200_v5 = vand.u32 4294901760, %v2352_v55 }
  0x5f   :  { %694 = vmatprep.mubr.f32.mxu1 %v3195_v59  ;;  %1819 = vmatpush3.msra.mxu0 %v3196_v30 }
  0x60   :  { %1849 = vmatpush3.msra.mxu1 %v2093_v9  ;;  %1820 = vmatprep.subr.mxu0 %v3198_v0  ;;  %v3201_v9 = vand.u32 4294901760, %v2368_v28  ;;  %v3217_v28 = vand.u32 4294901760, %v2547_v61  ;;  %v3224_v61 = vand.u32 4294901760, %v3223_v13 }
  0x61   :  { %698 = vmatmul.mubr.f32.gmra.mxu1 %v3197_v3  ;;  %1850 = vmatprep.subr.mxu1 %v2095_v10  ;;  %v3203_v10 = vand.u32 4294901760, %v2408_v46  ;;  %v3219_v46 = vand.u32 4294901760, %v2574_v43 }
  0x62   :  { %1821 = vmatpush3.msra.mxu0 %v3199_v4  ;;  %1851 = vmatpush3.msra.mxu1 %v2097_v11  ;;  %v3204_v11 = vand.u32 4294901760, %v2420_v60 }
  0x63   :  { %1822 = vmatprep.subr.mxu0 %v3200_v5  ;;  %1852 = vmatprep.subr.mxu1 %v2109_v15  ;;  %v3205_v15 = vand.u32 4294901760, %v3164_v56 }
  0x64   :  { %1823 = vmatpush3.msra.mxu0 %v3201_v9  ;;  %1853 = vmatpush3.msra.mxu1 %v2111_v16  ;;  %v3206_v16 = vand.u32 4294901760, %v3166_v33 }
  0x65   :  { %1824 = vmatprep.subr.mxu0 %v3202_v8  ;;  %1854 = vmatprep.subr.mxu1 %v2113_v17  ;;  %v3208_v17 = vld [vmem:[#allocation30_spill] sm:$0xff] }
  0x66   :  { %1825 = vmatpush3.msra.mxu0 %v3203_v10  ;;  %1855 = vmatpush3.msra.mxu1 %v2135_v22  ;;  %v3209_v55 = vand.u32 4294901760, %v3208_v17  ;;  %v3210_v22 = vand.u32 4294901760, %v2488_v53  ;;  %v3218_v53 = vand.u32 4294901760, %v2564_v41  ;;  %v3227_v41 = vld [vmem:[#allocation33_spill] sm:$0xff] }
  0x67   :  { %1826 = vmatprep.subr.mxu0 %v3204_v11  ;;  %1856 = vmatprep.subr.mxu1 %v2141_v24  ;;  %v3211_v24 = vld [vmem:[#allocation31_spill] sm:$0xff] }
  0x68   :  { %1827 = vmatpush3.msra.mxu0 %v3205_v15  ;;  %1857 = vmatpush3.msra.mxu1 %v3165_v47  ;;  %v3212_v60 = vand.u32 4294901760, %v3211_v24 }
  0x69   :  { %1828 = vmatprep.subr.mxu0 %v3206_v16  ;;  %1858 = vmatprep.subr.mxu1 %v3207_v34 }
  0x6a   :  { %1829 = vmatpush3.msra.mxu0 %v3209_v55  ;;  %1859 = vmatpush3.msra.mxu1 %v3168_v12  ;;  %v3228_v12 = vld [vmem:[#allocation23_spill] sm:$0xff] }
  0x6b   :  { %1830 = vmatprep.subr.mxu0 %v3210_v22  ;;  %1860 = vmatprep.subr.mxu1 %v3169_v62  ;;  %v3225_v62 = vld [vmem:[#allocation32_spill] sm:$0xff] }
  0x6c   :  { %1831 = vmatpush3.msra.mxu0 %v3212_v60  ;;  %1861 = vmatpush3.msra.mxu1 %v3170_v37 }
  0x6d   :  { %1832 = vmatprep.subr.mxu0 %v3213_v42  ;;  %1862 = vmatprep.subr.mxu1 %v3171_v26  ;;  %v3221_v26 = vand.u32 4294901760, %v2583_v14 }
  0x6e   :  { %1833 = vmatpush3.msra.mxu0 %v3215_v21  ;;  %1863 = vmatpush3.msra.mxu1 %v3172_v20 }
  0x6f   :  { %1834 = vmatprep.subr.mxu0 %v3216_v6  ;;  %1864 = vmatprep.subr.mxu1 %v3173_v2 }
  0x70   :  { %1835 = vmatpush3.msra.mxu0 %v3217_v28  ;;  %1865 = vmatpush3.msra.mxu1 %v3174_v36  ;;  %v3226_v36 = vld [vmem:[#allocation22_spill] sm:$0xff] }
  0x71   :  { %1836 = vmatprep.subr.mxu0 %v3218_v53  ;;  %1866 = vmatprep.subr.mxu1 %v3175_v27 }
  0x72   :  { %1837 = vmatpush3.msra.mxu0 %v3219_v46  ;;  %1867 = vmatpush3.msra.mxu1 %v3220_v57 }
  0x73   :  { %1838 = vmatprep.subr.mxu0 %v3221_v26  ;;  %1868 = vmatprep.subr.mxu1 %v3222_v19 }
  0x74   :  { %1839 = vmatpush3.msra.mxu0 %v3224_v61  ;;  %864 = vmatprep.mubr.f32.mxu0 %v3225_v62 }
  0x75   :  { %1869 = vmatpush3.msra.mxu1 %v3226_v36  ;;  %866 = vmatmul.mubr.f32.vlgmr.msra.gmra.mxu0 %v3227_v41 }
  0x76   :  { %1870 = vmatprep.subr.mxu1 %v3228_v12  ;;  %871 = vmatprep.mubr.f32.mxu0 %v2616_v51 }
  0x77   :  { %1871 = vmatpush3.msra.mxu1 %v3179_v54  ;;  %975 = vmatprep.mubr.f32.mxu1 %v3225_v62 }
  0x78   :  { %1872 = vmatprep.subr.mxu1 %v3181_v44  ;;  %v1623_v44 = vld [vmem:[%s3050_s3] ss:$0 sm:$0xff] }
  0x79   :  { %1873 = vmatpush3.msra.mxu1 %v3184_v39  ;;  %873 = vmatmul.mubr.f32.gmra.mxu0 %v2622_v7 }
  0x7a   :  { %1874 = vmatprep.subr.mxu1 %v3185_v18 }
  0x7b   :  { %1875 = vmatpush3.msra.mxu1 %v2459_v38  ;;  %v2817_v38 = vld [vmem:[%s3052_s5] sm:$0xff] }
  0x7c   :  { %1876 = vmatprep.subr.mxu1 %v2476_v52  ;;  %v2812_v52 = vld [vmem:[%s3049_s2] sm:$0xff] }
  0x7d   :  { %1877 = vmatpush3.msra.mxu1 %v2498_v58 }
  0x7e   :  { %977 = vmatmul.mubr.f32.vlgmr.msra.gmra.mxu1 %v3227_v41 }
  0x7f   :  { %982 = vmatprep.mubr.f32.mxu1 %v2616_v51 }
  0x82   :  { %984 = vmatmul.mubr.f32.gmra.mxu1 %v2622_v7  ;;  %v999_v7 = vmul.f32 %v2817_v38, %v2812_v52 }
  0x84   :  { %v1000_v20 = vsel %vm989_vm0, %v999_v7, 0.0 }
  0x85   :  { %v1001_v18 = vrot.slane %v1000_v20, 4 }
  0x87   :  { %v1002_v29 = vadd.f32 %v1001_v18, %v1000_v20 }
  0x89   :  { %v1003_v5 = vrot.slane %v1002_v29, 2 }
  0x8b   :  { %v1004_v22 = vadd.f32 %v1003_v5, %v1002_v29 }
  0x8d   :  { %v1005_v26 = vrot.slane %v1004_v22, 1 }
  0x8f   :  { %v1006_v13 = vadd.f32 %v1005_v26, %v1004_v22 }
  0xee   :  { %v1688_v43 = vpop.f32.mrf.mxu0 }
  0xf0   :  { %v1689_v14 = vpop.f32.mrf.mxu0 }
  0xf1   :  { %v1690_v27 = vadd.f32 %v1689_v14, %v1688_v43  ;;  %v993_v43 = vlaneseq }
  0xf3   :  { %v180_v31 = vadd.f32 %v1690_v27, %v1623_v44  ;;  %v2827_v14 = vshrl.u32 %v993_v43, 7 }
  0xf5   :  { %vm995_vm2 = vcmp.eq.s32.totalorder %v2827_v14, 7  ;;  %vm1018_vm3 = vcmp.eq.s32.totalorder %v2827_v14, 0  ;;  %vm1054_vm4 = vcmp.eq.s32.totalorder %v2827_v14, 1  ;;  %vm1090_vm6 = vcmp.eq.s32.totalorder %v2827_v14, 2 }
  0xf6   :  { %vm1126_vm8 = vcmp.eq.s32.totalorder %v2827_v14, 3  ;;  %vm1162_vm10 = vcmp.eq.s32.totalorder %v2827_v14, 4  ;;  %vm1198_vm12 = vcmp.eq.s32.totalorder %v2827_v14, 5  ;;  %vm1234_vm14 = vcmp.eq.s32.totalorder %v2827_v14, 6 }
  0xf7   :  { %v1726_v39 = vpop.f32.mrf.mxu1 }
  0xf9   :  { %v1727_v37 = vpop.f32.mrf.mxu1 }
  0xfa   :  { %v1728_v63 = vadd.f32 %v1727_v37, %v1726_v39  ;;  %v1032_v37 = vrot.slane %v2817_v38, 1 }
  0xfc   :  { %v427_v3 = vadd.f32 %v1728_v63, %v180_v31  ;;  %v1050_v63 = vld [vmem:[%s3051_s4 + $0x1] sm:$0x1] }
 0x10b   :  { %v1691_v49 = vpop.f32.mrf.mxu0 }
 0x10d   :  { %v1692_v50 = vpop.f32.mrf.mxu0 }
 0x10e   :  { %v1693_v23 = vadd.f32 %v1692_v50, %v1691_v49  ;;  %v1014_v49 = vld [vmem:[%s3051_s4] sm:$0x1]  ;;  %v2833_v50 = vsub.s32 0, %v2827_v14 }
 0x110   :  { %v1764_v2 = vpop.f32.mrf.mxu0  ;;  %v195_v40 = vadd.f32 %v1693_v23, %v1623_v44 }
 0x112   :  { %v1765_v58 = vpop.f32.mrf.mxu0 }
 0x113   :  { %v1766_v45 = vadd.f32 %v1765_v58, %v1764_v2  ;;  %v2018_v2 = vmov 0.0  }
 0x114   :  { %v1729_v56 = vpop.f32.mrf.mxu1 }
 0x115   :  { %v572_v9 = vadd.f32 %v1766_v45, %v427_v3 }
 0x116   :  { %v1730_v51 = vpop.f32.mrf.mxu1 }
 0x117   :  { %v1767_v47 = vpop.f32.mrf.mxu0  ;;  %v1731_v59 = vadd.f32 %v1730_v51, %v1729_v56 }
 0x119   :  { %v1768_v1 = vpop.f32.mrf.mxu0  ;;  %v434_v8 = vadd.f32 %v1731_v59, %v195_v40 }
 0x11a   :  { %v1769_v10 = vadd.f32 %v1768_v1, %v1767_v47 }
 0x11b   :  { %v1802_v33 = vpop.f32.mrf.mxu1 }
 0x11c   :  { %v581_v24 = vadd.f32 %v1769_v10, %v434_v8 }
 0x11d   :  { %v1803_v54 = vpop.f32.mrf.mxu1 }
 0x11e   :  { %v1804_v0 = vadd.f32 %v1803_v54, %v1802_v33 }
 0x120   :  { %v689_v34 = vadd.f32 %v1804_v0, %v572_v9 }
 0x121   :  { %v1805_v35 = vpop.f32.mrf.mxu1 }
 0x123   :  { %v1806_v4 = vpop.f32.mrf.mxu1 }
 0x124   :  { %v1807_v17 = vadd.f32 %v1806_v4, %v1805_v35 }
 0x126   :  { %v700_v6 = vadd.f32 %v1807_v17, %v581_v24 }
 0x135   :  { %v1840_v25 = vpop.f32.mrf.mxu0 }
 0x137   :  { %v1841_v32 = vpop.f32.mrf.mxu0 }
 0x138   :  { %v1842_v11 = vadd.f32 %v1841_v32, %v1840_v25 }
 0x139   :  { %v1843_v30 = vpop.f32.mrf.mxu0 }
 0x13a   :  { %v868_v60 = vadd.f32 %v1842_v11, %v689_v34 }
 0x13b   :  { %v1844_v15 = vpop.f32.mrf.mxu0 }
 0x13c   :  { %v1845_v42 = vadd.f32 %v1844_v15, %v1843_v30 }
 0x13e   :  { %v1878_v16 = vpop.f32.mrf.mxu1  ;;  %v875_v46 = vadd.f32 %v1845_v42, %v700_v6 }
 0x140   :  { %v1879_v55 = vpop.f32.mrf.mxu1 }
 0x141   :  { %v1880_v48 = vadd.f32 %v1879_v55, %v1878_v16 }
 0x142   :  { %v1881_v21 = vpop.f32.mrf.mxu1 }
 0x143   :  { %v979_v28 = vadd.f32 %v1880_v48, %v868_v60  ;;  %v1086_v48 = vld [vmem:[%s3051_s4 + $0x2] sm:$0x1] }
 0x144   :  { %v1882_v53 = vpop.f32.mrf.mxu1 }
 0x145   :  { %990 = vst.msk [vmem:[#allocation2] sm:$0xff] %vm989_vm0, %v979_v28  ;;  %v1883_v57 = vadd.f32 %v1882_v53, %v1881_v21 }
 0x147   :  { %v986_v19 = vadd.f32 %v1883_v57, %v875_v46 }
 0x149   :  { %991 = vst.msk [vmem:[#allocation2 + $0x8] sm:$0xff] %vm989_vm0, %v986_v19 }
 0x14c   :  { %v998_v61 = vld [vmem:[#allocation2] sm:$0x1]  ;;  %v1034_v54 = vld [vmem:[#allocation2 + $0x1] sm:$0x1]  ;;  %v1070_v55 = vld [vmem:[#allocation2 + $0x2] sm:$0x1] }
 0x14d   :  { %v1007_v62 = vadd.f32 %v1006_v13, %v998_v61 }
 0x14f   :  { %v1624_v36 = vmul.f32 -1.442695, %v1007_v62 }
 0x151   :  { %1890 = vpow2.f32 %v1624_v36 }
 0x15e   :  { %v1891_v41 = vpop.eup %1890 }
 0x15f   :  { %v1011_v12 = vadd.f32 1.0, %v1891_v41 }
 0x161   :  { %1892 = vrcp.f32 %v1011_v12 }
 0x16e   :  { %v1893_v39 = vpop.eup %1892 }
 0x16f   :  { %vm1015_vm1 = vcmp.lt.f32.partialorder %v1014_v49, %v1893_v39  ;;  %v1023_v35 = vrot.slane %v1893_v39, %v2833_v50  ;;  %v1106_v39 = vld [vmem:[#allocation2 + $0x3] sm:$0x1] }
 0x170   :  { %v1625_v56 = vsel %vm1015_vm1, 1.0, %v2018_v2 }
 0x171   :  { %v1029_v58 = vrot.slane %v1625_v56, %v2833_v50  ;;  %v1024_v45 = vsel %vm1018_vm3, %v1023_v35, 0.0 }
 0x173   :  { %v1033_v51 = vsel %vm995_vm2, %v1029_v58, %v1032_v37  ;;  %v1030_v0 = vsel %vm1018_vm3, %v1029_v58, 0.0 }
 0x174   :  { %v1035_v7 = vmul.f32 %v1033_v51, %v2812_v52  ;;  %v1068_v30 = vrot.slane %v1033_v51, 1 }
 0x176   :  { %v1036_v47 = vsel %vm989_vm0, %v1035_v7, 0.0  ;;  %v1122_v7 = vld [vmem:[%s3051_s4 + $0x3] sm:$0x1] }
 0x177   :  { %v1037_v33 = vrot.slane %v1036_v47, 4 }
 0x179   :  { %v1038_v20 = vadd.f32 %v1037_v33, %v1036_v47 }
 0x17b   :  { %v1039_v27 = vrot.slane %v1038_v20, 2 }
 0x17d   :  { %v1040_v44 = vadd.f32 %v1039_v27, %v1038_v20 }
 0x17f   :  { %v1041_v1 = vrot.slane %v1040_v44, 1 }
 0x181   :  { %v1042_v38 = vadd.f32 %v1041_v1, %v1040_v44 }
 0x183   :  { %v1043_v18 = vadd.f32 %v1042_v38, %v1034_v54 }
 0x185   :  { %v1626_v23 = vmul.f32 -1.442695, %v1043_v18 }
 0x187   :  { %1894 = vpow2.f32 %v1626_v23 }
 0x194   :  { %v1895_v25 = vpop.eup %1894 }
 0x195   :  { %v1047_v31 = vadd.f32 1.0, %v1895_v25 }
 0x197   :  { %1896 = vrcp.f32 %v1047_v31 }
 0x1a4   :  { %v1897_v32 = vpop.eup %1896 }
 0x1a5   :  { %vm1051_vm5 = vcmp.lt.f32.partialorder %v1050_v63, %v1897_v32  ;;  %v1059_v29 = vrot.slane %v1897_v32, %v2833_v50 }
 0x1a6   :  { %v1627_v40 = vsel %vm1051_vm5, 1.0, %v2018_v2 }
 0x1a7   :  { %v1065_v59 = vrot.slane %v1627_v40, %v2833_v50  ;;  %v1060_v3 = vsel %vm1054_vm4, %v1059_v29, %v1024_v45  ;;  %v1142_v40 = vld [vmem:[#allocation2 + $0x4] sm:$0x1] }
 0x1a9   :  { %v1066_v4 = vsel %vm1054_vm4, %v1065_v59, %v1030_v0  ;;  %v1069_v5 = vsel %vm995_vm2, %v1065_v59, %v1068_v30  ;;  %v1158_v0 = vld [vmem:[%s3051_s4 + $0x4] sm:$0x1] }
 0x1aa   :  { %v1071_v9 = vmul.f32 %v1069_v5, %v2812_v52  ;;  %v1104_v46 = vrot.slane %v1069_v5, 1 }
 0x1ac   :  { %v1072_v8 = vsel %vm989_vm0, %v1071_v9, 0.0 }
 0x1ad   :  { %v1073_v10 = vrot.slane %v1072_v8, 4 }
 0x1af   :  { %v1074_v11 = vadd.f32 %v1073_v10, %v1072_v8 }
 0x1b1   :  { %v1075_v15 = vrot.slane %v1074_v11, 2 }
 0x1b3   :  { %v1076_v16 = vadd.f32 %v1075_v15, %v1074_v11 }
 0x1b5   :  { %v1077_v34 = vrot.slane %v1076_v16, 1 }
 0x1b7   :  { %v1078_v17 = vadd.f32 %v1077_v34, %v1076_v16 }
 0x1b9   :  { %v1079_v22 = vadd.f32 %v1078_v17, %v1070_v55 }
 0x1bb   :  { %v1628_v24 = vmul.f32 -1.442695, %v1079_v22 }
 0x1bd   :  { %1898 = vpow2.f32 %v1628_v24 }
 0x1ca   :  { %v1899_v60 = vpop.eup %1898 }
 0x1cb   :  { %v1083_v42 = vadd.f32 1.0, %v1899_v60 }
 0x1cd   :  { %1900 = vrcp.f32 %v1083_v42 }
 0x1da   :  { %v1901_v21 = vpop.eup %1900 }
 0x1db   :  { %vm1087_vm7 = vcmp.lt.f32.partialorder %v1086_v48, %v1901_v21  ;;  %v1095_v6 = vrot.slane %v1901_v21, %v2833_v50  ;;  %v1178_v21 = vld [vmem:[#allocation2 + $0x5] sm:$0x1] }
 0x1dc   :  { %v1629_v28 = vsel %vm1087_vm7, 1.0, %v2018_v2 }
 0x1dd   :  { %v1101_v53 = vrot.slane %v1629_v28, %v2833_v50  ;;  %v1096_v57 = vsel %vm1090_vm6, %v1095_v6, %v1060_v3 }
 0x1df   :  { %v1102_v26 = vsel %vm1090_vm6, %v1101_v53, %v1066_v4  ;;  %v1105_v19 = vsel %vm995_vm2, %v1101_v53, %v1104_v46 }
 0x1e0   :  { %v1107_v13 = vmul.f32 %v1105_v19, %v2812_v52  ;;  %v1140_v44 = vrot.slane %v1105_v19, 1 }
 0x1e2   :  { %v1108_v61 = vsel %vm989_vm0, %v1107_v13, 0.0 }
 0x1e3   :  { %v1109_v62 = vrot.slane %v1108_v61, 4 }
 0x1e5   :  { %v1110_v36 = vadd.f32 %v1109_v62, %v1108_v61 }
 0x1e7   :  { %v1111_v41 = vrot.slane %v1110_v36, 2 }
 0x1e9   :  { %v1112_v12 = vadd.f32 %v1111_v41, %v1110_v36 }
 0x1eb   :  { %v1113_v43 = vrot.slane %v1112_v12, 1 }
 0x1ed   :  { %v1114_v49 = vadd.f32 %v1113_v43, %v1112_v12 }
 0x1ef   :  { %v1115_v37 = vadd.f32 %v1114_v49, %v1106_v39 }
 0x1f1   :  { %v1630_v56 = vmul.f32 -1.442695, %v1115_v37 }
 0x1f3   :  { %1902 = vpow2.f32 %v1630_v56 }
 0x200   :  { %v1903_v58 = vpop.eup %1902 }
 0x201   :  { %v1119_v51 = vadd.f32 1.0, %v1903_v58 }
 0x203   :  { %1904 = vrcp.f32 %v1119_v51 }
 0x210   :  { %v1905_v47 = vpop.eup %1904 }
 0x211   :  { %vm1123_vm9 = vcmp.lt.f32.partialorder %v1122_v7, %v1905_v47  ;;  %v1131_v33 = vrot.slane %v1905_v47, %v2833_v50  ;;  %v1214_v47 = vld [vmem:[#allocation2 + $0x6] sm:$0x1] }
 0x212   :  { %v1631_v20 = vsel %vm1123_vm9, 1.0, %v2018_v2 }
 0x213   :  { %v1137_v27 = vrot.slane %v1631_v20, %v2833_v50  ;;  %v1132_v1 = vsel %vm1126_vm8, %v1131_v33, %v1096_v57  ;;  %v1194_v57 = vld [vmem:[%s3051_s4 + $0x5] sm:$0x1] }
 0x215   :  { %v1138_v38 = vsel %vm1126_vm8, %v1137_v27, %v1102_v26  ;;  %v1141_v54 = vsel %vm995_vm2, %v1137_v27, %v1140_v44 }
 0x216   :  { %v1143_v18 = vmul.f32 %v1141_v54, %v2812_v52  ;;  %v1176_v10 = vrot.slane %v1141_v54, 1 }
 0x218   :  { %v1144_v23 = vsel %vm989_vm0, %v1143_v18, 0.0 }
 0x219   :  { %v1145_v25 = vrot.slane %v1144_v23, 4 }
 0x21b   :  { %v1146_v31 = vadd.f32 %v1145_v25, %v1144_v23 }
 0x21d   :  { %v1147_v63 = vrot.slane %v1146_v31, 2 }
 0x21f   :  { %v1148_v35 = vadd.f32 %v1147_v63, %v1146_v31 }
 0x221   :  { %v1149_v32 = vrot.slane %v1148_v35, 1 }
 0x223   :  { %v1150_v29 = vadd.f32 %v1149_v32, %v1148_v35 }
 0x225   :  { %v1151_v45 = vadd.f32 %v1150_v29, %v1142_v40 }
 0x227   :  { %v1632_v59 = vmul.f32 -1.442695, %v1151_v45 }
 0x229   :  { %1906 = vpow2.f32 %v1632_v59 }
 0x236   :  { %v1907_v30 = vpop.eup %1906 }
 0x237   :  { %v1155_v3 = vadd.f32 1.0, %v1907_v30 }
 0x239   :  { %1908 = vrcp.f32 %v1155_v3 }
 0x246   :  { %v1909_v4 = vpop.eup %1908 }
 0x247   :  { %vm1159_vm11 = vcmp.lt.f32.partialorder %v1158_v0, %v1909_v4  ;;  %v1167_v5 = vrot.slane %v1909_v4, %v2833_v50  ;;  %v1250_v0 = vld [vmem:[#allocation2 + $0x7] sm:$0x1] }
 0x248   :  { %v1633_v9 = vsel %vm1159_vm11, 1.0, %v2018_v2 }
 0x249   :  { %v1173_v8 = vrot.slane %v1633_v9, %v2833_v50  ;;  %v1168_v11 = vsel %vm1162_vm10, %v1167_v5, %v1132_v1  ;;  %v1230_v1 = vld [vmem:[%s3051_s4 + $0x6] sm:$0x1] }
 0x24b   :  { %v1174_v15 = vsel %vm1162_vm10, %v1173_v8, %v1138_v38  ;;  %v1177_v16 = vsel %vm995_vm2, %v1173_v8, %v1176_v10  ;;  %v1266_v10 = vld [vmem:[%s3051_s4 + $0x7] sm:$0x1] }
 0x24c   :  { %v1179_v34 = vmul.f32 %v1177_v16, %v2812_v52  ;;  %v1212_v62 = vrot.slane %v1177_v16, 1 }
 0x24e   :  { %v1180_v17 = vsel %vm989_vm0, %v1179_v34, 0.0 }
 0x24f   :  { %v1181_v55 = vrot.slane %v1180_v17, 4 }
 0x251   :  { %v1182_v22 = vadd.f32 %v1181_v55, %v1180_v17 }
 0x253   :  { %v1183_v24 = vrot.slane %v1182_v22, 2 }
 0x255   :  { %v1184_v60 = vadd.f32 %v1183_v24, %v1182_v22 }
 0x257   :  { %v1185_v42 = vrot.slane %v1184_v60, 1 }
 0x259   :  { %v1186_v48 = vadd.f32 %v1185_v42, %v1184_v60 }
 0x25b   :  { %v1187_v6 = vadd.f32 %v1186_v48, %v1178_v21 }
 0x25d   :  { %v1634_v28 = vmul.f32 -1.442695, %v1187_v6 }
 0x25f   :  { %1910 = vpow2.f32 %v1634_v28 }
 0x26c   :  { %v1911_v53 = vpop.eup %1910 }
 0x26d   :  { %v1191_v46 = vadd.f32 1.0, %v1911_v53 }
 0x26f   :  { %1912 = vrcp.f32 %v1191_v46 }
 0x27c   :  { %v1913_v26 = vpop.eup %1912 }
 0x27d   :  { %vm1195_vm13 = vcmp.lt.f32.partialorder %v1194_v57, %v1913_v26  ;;  %v1203_v19 = vrot.slane %v1913_v26, %v2833_v50  ;;  %v1285_v26 = vld [vmem:[#allocation2 + $0x8] sm:$0x1] }
 0x27e   :  { %v1635_v13 = vsel %vm1195_vm13, 1.0, %v2018_v2 }
 0x27f   :  { %v1209_v61 = vrot.slane %v1635_v13, %v2833_v50  ;;  %v1204_v36 = vsel %vm1198_vm12, %v1203_v19, %v1168_v11 }
 0x281   :  { %v1210_v41 = vsel %vm1198_vm12, %v1209_v61, %v1174_v15  ;;  %v1213_v12 = vsel %vm995_vm2, %v1209_v61, %v1212_v62 }
 0x282   :  { %v1215_v43 = vmul.f32 %v1213_v12, %v2812_v52  ;;  %v1248_v25 = vrot.slane %v1213_v12, 1 }
 0x284   :  { %v1216_v49 = vsel %vm989_vm0, %v1215_v43, 0.0 }
 0x285   :  { %v1217_v39 = vrot.slane %v1216_v49, 4 }
 0x287   :  { %v1218_v37 = vadd.f32 %v1217_v39, %v1216_v49 }
 0x289   :  { %v1219_v56 = vrot.slane %v1218_v37, 2 }
 0x28b   :  { %v1220_v58 = vadd.f32 %v1219_v56, %v1218_v37 }
 0x28d   :  { %v1221_v51 = vrot.slane %v1220_v58, 1 }
 0x28f   :  { %v1222_v7 = vadd.f32 %v1221_v51, %v1220_v58 }
 0x291   :  { %v1223_v33 = vadd.f32 %v1222_v7, %v1214_v47 }
 0x293   :  { %v1636_v20 = vmul.f32 -1.442695, %v1223_v33 }
 0x295   :  { %1914 = vpow2.f32 %v1636_v20 }
 0x2a2   :  { %v1915_v27 = vpop.eup %1914 }
 0x2a3   :  { %v1227_v44 = vadd.f32 1.0, %v1915_v27  ;;  %v1321_v27 = vld [vmem:[#allocation2 + $0x9] sm:$0x1] }
 0x2a5   :  { %1916 = vrcp.f32 %v1227_v44 }
 0x2b2   :  { %v1917_v38 = vpop.eup %1916 }
 0x2b3   :  { %vm1231_vm15 = vcmp.lt.f32.partialorder %v1230_v1, %v1917_v38  ;;  %v1239_v54 = vrot.slane %v1917_v38, %v2833_v50 }
 0x2b4   :  { %v1637_v18 = vsel %vm1231_vm15, 1.0, %v2018_v2 }
 0x2b5   :  { %v1245_v23 = vrot.slane %v1637_v18, %v2833_v50  ;;  %v1240_v31 = vsel %vm1234_vm14, %v1239_v54, %v1204_v36  ;;  %v1301_v36 = vld [vmem:[%s3051_s4 + $0x8] sm:$0x1]  ;;  %v2941_v18 = vadd.s32 8, %v2827_v14 }
 0x2b7   :  { %v1249_v63 = vsel %vm995_vm2, %v1245_v23, %v1248_v25  ;;  %v1246_v22 = vsel %vm1234_vm14, %v1245_v23, %v1210_v41  ;;  %v1337_v23 = vld [vmem:[%s3051_s4 + $0x9] sm:$0x1]  ;;  %vm1306_vm4 = vcmp.eq.s32.totalorder %v2941_v18, 8  ;;  %vm1342_vm5 = vcmp.eq.s32.totalorder %v2941_v18, 9 }
 0x2b8   :  { %v1251_v35 = vmul.f32 %v1249_v63, %v2812_v52  ;;  %v1283_v17 = vrot.slane %v1249_v63, 1  ;;  %vm1378_vm7 = vcmp.eq.s32.totalorder %v2941_v18, 10  ;;  %vm1414_vm9 = vcmp.eq.s32.totalorder %v2941_v18, 11 }
 0x2b9   :  { %vm1450_vm11 = vcmp.eq.s32.totalorder %v2941_v18, 12  ;;  %vm1486_vm13 = vcmp.eq.s32.totalorder %v2941_v18, 13  ;;  %vm1522_vm15 = vcmp.eq.s32.totalorder %v2941_v18, 14 }
 0x2ba   :  { %v1252_v32 = vsel %vm989_vm0, %v1251_v35, 0.0 }
 0x2bb   :  { %v1253_v29 = vrot.slane %v1252_v32, 4 }
 0x2bd   :  { %v1254_v40 = vadd.f32 %v1253_v29, %v1252_v32 }
 0x2bf   :  { %v1255_v45 = vrot.slane %v1254_v40, 2 }
 0x2c1   :  { %v1256_v59 = vadd.f32 %v1255_v45, %v1254_v40 }
 0x2c3   :  { %v1257_v30 = vrot.slane %v1256_v59, 1 }
 0x2c5   :  { %v1258_v3 = vadd.f32 %v1257_v30, %v1256_v59 }
 0x2c7   :  { %v1259_v4 = vadd.f32 %v1258_v3, %v1250_v0 }
 0x2c9   :  { %v1638_v5 = vmul.f32 -1.442695, %v1259_v4 }
 0x2cb   :  { %1918 = vpow2.f32 %v1638_v5 }
 0x2d8   :  { %v1919_v9 = vpop.eup %1918 }
 0x2d9   :  { %v1263_v8 = vadd.f32 1.0, %v1919_v9 }
 0x2db   :  { %1920 = vrcp.f32 %v1263_v8 }
 0x2e8   :  { %v1921_v11 = vpop.eup %1920 }
 0x2e9   :  { %vm1267_vm1 = vcmp.lt.f32.partialorder %v1266_v10, %v1921_v11  ;;  %v1274_v15 = vrot.slane %v1921_v11, %v2833_v50 }
 0x2ea   :  { %v1639_v16 = vsel %vm1267_vm1, 1.0, %v2018_v2 }
 0x2eb   :  { %v1280_v34 = vrot.slane %v1639_v16, %v2833_v50  ;;  %v1275_v55 = vsel %vm995_vm2, %v1274_v15, %v1240_v31  ;;  %v1357_v16 = vld [vmem:[#allocation2 + $0xa] sm:$0x1] }
 0x2ec   :  { %1573 = vst.msk [vmem:[#allocation3] sm:$0xff] %vm989_vm0, %v1275_v55 }
 0x2ed   :  { %v1281_v24 = vsel %vm995_vm2, %v1280_v34, %v1246_v22  ;;  %v1284_v60 = vsel %vm995_vm2, %v1280_v34, %v1283_v17 }
 0x2ee   :  { %v1286_v42 = vmul.f32 %v1284_v60, %v2812_v52  ;;  %1575 = vst.msk [vmem:[#allocation5] sm:$0xff] %vm989_vm0, %v1281_v24  ;;  %v1319_v49 = vrot.slane %v1284_v60, 1  ;;  %v1373_v24 = vld [vmem:[%s3051_s4 + $0xa] sm:$0x1] }
 0x2f0   :  { %v1287_v48 = vsel %vm989_vm0, %v1286_v42, 0.0 }
 0x2f1   :  { %v1288_v21 = vrot.slane %v1287_v48, 4 }
 0x2f3   :  { %v1289_v6 = vadd.f32 %v1288_v21, %v1287_v48 }
 0x2f5   :  { %v1290_v28 = vrot.slane %v1289_v6, 2 }
 0x2f7   :  { %v1291_v53 = vadd.f32 %v1290_v28, %v1289_v6 }
 0x2f9   :  { %v1292_v46 = vrot.slane %v1291_v53, 1 }
 0x2fb   :  { %v1293_v57 = vadd.f32 %v1292_v46, %v1291_v53 }
 0x2fd   :  { %v1294_v19 = vadd.f32 %v1293_v57, %v1285_v26 }
 0x2ff   :  { %v1640_v13 = vmul.f32 -1.442695, %v1294_v19 }
 0x301   :  { %1922 = vpow2.f32 %v1640_v13 }
 0x30e   :  { %v1923_v61 = vpop.eup %1922 }
 0x30f   :  { %v1298_v62 = vadd.f32 1.0, %v1923_v61 }
 0x311   :  { %1924 = vrcp.f32 %v1298_v62 }
 0x31e   :  { %v1925_v41 = vpop.eup %1924 }
 0x31f   :  { %vm1302_vm3 = vcmp.lt.f32.partialorder %v1301_v36, %v1925_v41  ;;  %v1310_v25 = vrot.slane %v1925_v41, %v2833_v50 }
 0x320   :  { %v1641_v12 = vsel %vm1302_vm3, 1.0, %v2018_v2  ;;  %vm1558_vm3 = vcmp.eq.s32.totalorder %v2941_v18, 15 }
 0x321   :  { %v1316_v43 = vrot.slane %v1641_v12, %v2833_v50  ;;  %v1312_v32 = vsel %vm1306_vm4, %v1310_v25, 0.0  ;;  %v1393_v12 = vld [vmem:[#allocation2 + $0xb] sm:$0x1] }
 0x323   :  { %v1320_v39 = vsel %vm995_vm2, %v1316_v43, %v1319_v49  ;;  %v1318_v59 = vsel %vm1306_vm4, %v1316_v43, 0.0 }
 0x324   :  { %v1322_v37 = vmul.f32 %v1320_v39, %v2812_v52  ;;  %v1355_v40 = vrot.slane %v1320_v39, 1 }
 0x326   :  { %v1323_v56 = vsel %vm989_vm0, %v1322_v37, 0.0 }
 0x327   :  { %v1324_v58 = vrot.slane %v1323_v56, 4 }
 0x329   :  { %v1325_v51 = vadd.f32 %v1324_v58, %v1323_v56  ;;  %v1409_v56 = vld [vmem:[%s3051_s4 + $0xb] sm:$0x1] }
 0x32b   :  { %v1326_v7 = vrot.slane %v1325_v51, 2 }
 0x32d   :  { %v1327_v47 = vadd.f32 %v1326_v7, %v1325_v51 }
 0x32f   :  { %v1328_v33 = vrot.slane %v1327_v47, 1 }
 0x331   :  { %v1329_v20 = vadd.f32 %v1328_v33, %v1327_v47 }
 0x333   :  { %v1330_v44 = vadd.f32 %v1329_v20, %v1321_v27 }
 0x335   :  { %v1642_v1 = vmul.f32 -1.442695, %v1330_v44 }
 0x337   :  { %1926 = vpow2.f32 %v1642_v1 }
 0x344   :  { %v1927_v38 = vpop.eup %1926 }
 0x345   :  { %v1334_v54 = vadd.f32 1.0, %v1927_v38 }
 0x347   :  { %1928 = vrcp.f32 %v1334_v54 }
 0x354   :  { %v1929_v31 = vpop.eup %1928 }
 0x355   :  { %vm1338_vm6 = vcmp.lt.f32.partialorder %v1337_v23, %v1929_v31  ;;  %v1346_v63 = vrot.slane %v1929_v31, %v2833_v50 }
 0x356   :  { %v1643_v35 = vsel %vm1338_vm6, 1.0, %v2018_v2 }
 0x357   :  { %v1352_v29 = vrot.slane %v1643_v35, %v2833_v50  ;;  %v1348_v45 = vsel %vm1342_vm5, %v1346_v63, %v1312_v32  ;;  %v1429_v32 = vld [vmem:[#allocation2 + $0xc] sm:$0x1] }
 0x359   :  { %v1354_v30 = vsel %vm1342_vm5, %v1352_v29, %v1318_v59  ;;  %v1356_v3 = vsel %vm995_vm2, %v1352_v29, %v1355_v40 }
 0x35a   :  { %v1358_v0 = vmul.f32 %v1356_v3, %v2812_v52  ;;  %v1391_v6 = vrot.slane %v1356_v3, 1 }
 0x35c   :  { %v1359_v4 = vsel %vm989_vm0, %v1358_v0, 0.0 }
 0x35d   :  { %v1360_v5 = vrot.slane %v1359_v4, 4 }
 0x35f   :  { %v1361_v9 = vadd.f32 %v1360_v5, %v1359_v4 }
 0x361   :  { %v1362_v8 = vrot.slane %v1361_v9, 2 }
 0x363   :  { %v1363_v10 = vadd.f32 %v1362_v8, %v1361_v9 }
 0x365   :  { %v1364_v11 = vrot.slane %v1363_v10, 1 }
 0x367   :  { %v1365_v15 = vadd.f32 %v1364_v11, %v1363_v10 }
 0x369   :  { %v1366_v34 = vadd.f32 %v1365_v15, %v1357_v16 }
 0x36b   :  { %v1644_v17 = vmul.f32 -1.442695, %v1366_v34 }
 0x36d   :  { %1930 = vpow2.f32 %v1644_v17 }
 0x37a   :  { %v1931_v55 = vpop.eup %1930 }
 0x37b   :  { %v1370_v22 = vadd.f32 1.0, %v1931_v55 }
 0x37d   :  { %1932 = vrcp.f32 %v1370_v22 }
 0x38a   :  { %v1933_v60 = vpop.eup %1932 }
 0x38b   :  { %vm1374_vm8 = vcmp.lt.f32.partialorder %v1373_v24, %v1933_v60  ;;  %v1382_v42 = vrot.slane %v1933_v60, %v2833_v50 }
 0x38c   :  { %v1645_v48 = vsel %vm1374_vm8, 1.0, %v2018_v2 }
 0x38d   :  { %v1388_v21 = vrot.slane %v1645_v48, %v2833_v50  ;;  %v1384_v28 = vsel %vm1378_vm7, %v1382_v42, %v1348_v45  ;;  %v1465_v42 = vld [vmem:[#allocation2 + $0xd] sm:$0x1] }
 0x38f   :  { %v1390_v53 = vsel %vm1378_vm7, %v1388_v21, %v1354_v30  ;;  %v1392_v46 = vsel %vm995_vm2, %v1388_v21, %v1391_v6  ;;  %v1445_v30 = vld [vmem:[%s3051_s4 + $0xc] sm:$0x1] }
 0x390   :  { %v1394_v57 = vmul.f32 %v1392_v46, %v2812_v52  ;;  %v1427_v33 = vrot.slane %v1392_v46, 1 }
 0x392   :  { %v1395_v26 = vsel %vm989_vm0, %v1394_v57, 0.0 }
 0x393   :  { %v1396_v19 = vrot.slane %v1395_v26, 4 }
 0x395   :  { %v1397_v13 = vadd.f32 %v1396_v19, %v1395_v26 }
 0x397   :  { %v1398_v61 = vrot.slane %v1397_v13, 2 }
 0x399   :  { %v1399_v62 = vadd.f32 %v1398_v61, %v1397_v13 }
 0x39b   :  { %v1400_v36 = vrot.slane %v1399_v62, 1 }
 0x39d   :  { %v1401_v41 = vadd.f32 %v1400_v36, %v1399_v62 }
 0x39f   :  { %v1402_v43 = vadd.f32 %v1401_v41, %v1393_v12 }
 0x3a1   :  { %v1646_v49 = vmul.f32 -1.442695, %v1402_v43 }
 0x3a3   :  { %1934 = vpow2.f32 %v1646_v49 }
 0x3b0   :  { %v1935_v39 = vpop.eup %1934 }
 0x3b1   :  { %v1406_v37 = vadd.f32 1.0, %v1935_v39 }
 0x3b3   :  { %1936 = vrcp.f32 %v1406_v37 }
 0x3c0   :  { %v1937_v58 = vpop.eup %1936 }
 0x3c1   :  { %vm1410_vm10 = vcmp.lt.f32.partialorder %v1409_v56, %v1937_v58  ;;  %v1418_v51 = vrot.slane %v1937_v58, %v2833_v50 }
 0x3c2   :  { %v1647_v7 = vsel %vm1410_vm10, 1.0, %v2018_v2 }
 0x3c3   :  { %v1424_v47 = vrot.slane %v1647_v7, %v2833_v50  ;;  %v1420_v20 = vsel %vm1414_vm9, %v1418_v51, %v1384_v28  ;;  %v1501_v51 = vld [vmem:[#allocation2 + $0xe] sm:$0x1] }
 0x3c5   :  { %v1426_v27 = vsel %vm1414_vm9, %v1424_v47, %v1390_v53  ;;  %v1428_v44 = vsel %vm995_vm2, %v1424_v47, %v1427_v33  ;;  %v1481_v53 = vld [vmem:[%s3051_s4 + $0xd] sm:$0x1] }
 0x3c6   :  { %v1430_v1 = vmul.f32 %v1428_v44, %v2812_v52  ;;  %v1463_v9 = vrot.slane %v1428_v44, 1 }
 0x3c8   :  { %v1431_v38 = vsel %vm989_vm0, %v1430_v1, 0.0 }
 0x3c9   :  { %v1432_v54 = vrot.slane %v1431_v38, 4 }
 0x3cb   :  { %v1433_v23 = vadd.f32 %v1432_v54, %v1431_v38 }
 0x3cd   :  { %v1434_v25 = vrot.slane %v1433_v23, 2 }
 0x3cf   :  { %v1435_v31 = vadd.f32 %v1434_v25, %v1433_v23 }
 0x3d1   :  { %v1436_v63 = vrot.slane %v1435_v31, 1 }
 0x3d3   :  { %v1437_v35 = vadd.f32 %v1436_v63, %v1435_v31 }
 0x3d5   :  { %v1438_v29 = vadd.f32 %v1437_v35, %v1429_v32 }
 0x3d7   :  { %v1648_v40 = vmul.f32 -1.442695, %v1438_v29 }
 0x3d9   :  { %1938 = vpow2.f32 %v1648_v40 }
 0x3e6   :  { %v1939_v45 = vpop.eup %1938 }
 0x3e7   :  { %v1442_v59 = vadd.f32 1.0, %v1939_v45 }
 0x3e9   :  { %1940 = vrcp.f32 %v1442_v59 }
 0x3f6   :  { %v1941_v3 = vpop.eup %1940 }
 0x3f7   :  { %vm1446_vm12 = vcmp.lt.f32.partialorder %v1445_v30, %v1941_v3  ;;  %v1454_v0 = vrot.slane %v1941_v3, %v2833_v50  ;;  %v1537_v3 = vld [vmem:[#allocation2 + $0xf] sm:$0x1] }
 0x3f8   :  { %v1649_v4 = vsel %vm1446_vm12, 1.0, %v2018_v2 }
 0x3f9   :  { %v1460_v5 = vrot.slane %v1649_v4, %v2833_v50  ;;  %v1456_v8 = vsel %vm1450_vm11, %v1454_v0, %v1420_v20 }
 0x3fb   :  { %v1462_v10 = vsel %vm1450_vm11, %v1460_v5, %v1426_v27  ;;  %v1464_v11 = vsel %vm995_vm2, %v1460_v5, %v1463_v9  ;;  %v1517_v27 = vld [vmem:[%s3051_s4 + $0xe] sm:$0x1] }
 0x3fc   :  { %v1466_v15 = vmul.f32 %v1464_v11, %v2812_v52  ;;  %v1499_v13 = vrot.slane %v1464_v11, 1 }
 0x3fe   :  { %v1467_v16 = vsel %vm989_vm0, %v1466_v15, 0.0 }
 0x3ff   :  { %v1468_v34 = vrot.slane %v1467_v16, 4 }
 0x401   :  { %v1469_v17 = vadd.f32 %v1468_v34, %v1467_v16 }
 0x403   :  { %v1470_v55 = vrot.slane %v1469_v17, 2 }
 0x405   :  { %v1471_v22 = vadd.f32 %v1470_v55, %v1469_v17 }
 0x407   :  { %v1472_v24 = vrot.slane %v1471_v22, 1 }
 0x409   :  { %v1473_v60 = vadd.f32 %v1472_v24, %v1471_v22 }
 0x40b   :  { %v1474_v48 = vadd.f32 %v1473_v60, %v1465_v42 }
 0x40d   :  { %v1650_v21 = vmul.f32 -1.442695, %v1474_v48 }
 0x40f   :  { %1942 = vpow2.f32 %v1650_v21 }
 0x41c   :  { %v1943_v6 = vpop.eup %1942 }
 0x41d   :  { %v1478_v28 = vadd.f32 1.0, %v1943_v6 }
 0x41f   :  { %1944 = vrcp.f32 %v1478_v28 }
 0x42c   :  { %v1945_v46 = vpop.eup %1944 }
 0x42d   :  { %vm1482_vm14 = vcmp.lt.f32.partialorder %v1481_v53, %v1945_v46  ;;  %v1490_v57 = vrot.slane %v1945_v46, %v2833_v50 }
 0x42e   :  { %v1651_v26 = vsel %vm1482_vm14, 1.0, %v2018_v2 }
 0x42f   :  { %v1496_v19 = vrot.slane %v1651_v26, %v2833_v50  ;;  %v1492_v61 = vsel %vm1486_vm13, %v1490_v57, %v1456_v8  ;;  %v1553_v8 = vld [vmem:[%s3051_s4 + $0xf] sm:$0x1]  ;;  %s1954_s4 = scalar_lea.vmem %s1584_s18, 256 }
 0x430   :  { %p1955_p0 = scmp.ne.s32.totalorder %s1584_s18, %s1954_s4  ;;  %p1960_p2 = scmp.lt.s32.totalorder %s1954_s4, %s1954_s4 }
 0x431   :  { %v1498_v62 = vsel %vm1486_vm13, %v1496_v19, %v1462_v10  ;;  %v1500_v36 = vsel %vm995_vm2, %v1496_v19, %v1499_v13 }
 0x432   :  { %v1502_v41 = vmul.f32 %v1500_v36, %v2812_v52  ;;  %v1535_v23 = vrot.slane %v1500_v36, 1  ;;  %p1961_p3 = por %p1960_p2, %p1959_p1 }
 0x434   :  { %v1503_v12 = vsel %vm989_vm0, %v1502_v41, 0.0  ;;  %p1962_p4 = pnand %p1961_p3, %p1955_p0 }
 0x435   :  { %v1504_v43 = vrot.slane %v1503_v12, 4 }
 0x437   :  { %v1505_v49 = vadd.f32 %v1504_v43, %v1503_v12 }
 0x439   :  { %v1506_v39 = vrot.slane %v1505_v49, 2 }
 0x43b   :  { %v1507_v37 = vadd.f32 %v1506_v39, %v1505_v49 }
 0x43d   :  { %v1508_v56 = vrot.slane %v1507_v37, 1 }
 0x43f   :  { %v1509_v58 = vadd.f32 %v1508_v56, %v1507_v37 }
 0x441   :  { %v1510_v7 = vadd.f32 %v1509_v58, %v1501_v51 }
 0x443   :  { %v1652_v47 = vmul.f32 -1.442695, %v1510_v7 }
 0x445   :  { %1946 = vpow2.f32 %v1652_v47 }
 0x452   :  { %v1947_v33 = vpop.eup %1946 }
 0x453   :  { %v1514_v20 = vadd.f32 1.0, %v1947_v33 }
 0x455   :  { %1948 = vrcp.f32 %v1514_v20 }
 0x462   :  { %v1949_v44 = vpop.eup %1948 }
 0x463   :  { %vm1518_vm1 = vcmp.lt.f32.partialorder %v1517_v27, %v1949_v44  ;;  %v1526_v1 = vrot.slane %v1949_v44, %v2833_v50 }
 0x464   :  { %v1653_v38 = vsel %vm1518_vm1, 1.0, %v2018_v2 }
 0x465   :  { %v1532_v54 = vrot.slane %v1653_v38, %v2833_v50  ;;  %v1528_v25 = vsel %vm1522_vm15, %v1526_v1, %v1492_v61 }
 0x467   :  { %v1536_v31 = vsel %vm995_vm2, %v1532_v54, %v1535_v23  ;;  %v1534_v17 = vsel %vm1522_vm15, %v1532_v54, %v1498_v62 }
 0x468   :  { %v1538_v63 = vmul.f32 %v1536_v31, %v2812_v52  ;;  %v1571_v34 = vrot.slane %v1536_v31, 1 }
 0x46a   :  { %v1539_v35 = vsel %vm989_vm0, %v1538_v63, 0.0 }
 0x46b   :  { %v1540_v32 = vrot.slane %v1539_v35, 4 }
 0x46d   :  { %v1541_v29 = vadd.f32 %v1540_v32, %v1539_v35 }
 0x46f   :  { %v1542_v40 = vrot.slane %v1541_v29, 2 }
 0x471   :  { %v1543_v45 = vadd.f32 %v1542_v40, %v1541_v29 }
 0x473   :  { %v1544_v59 = vrot.slane %v1543_v45, 1 }
 0x475   :  { %v1545_v30 = vadd.f32 %v1544_v59, %v1543_v45 }
 0x477   :  { %v1546_v0 = vadd.f32 %v1545_v30, %v1537_v3 }
 0x479   :  { %v1654_v4 = vmul.f32 -1.442695, %v1546_v0 }
 0x47b   :  { %1950 = vpow2.f32 %v1654_v4 }
 0x488   :  { %v1951_v5 = vpop.eup %1950 }
 0x489   :  { %v1550_v9 = vadd.f32 1.0, %v1951_v5 }
 0x48b   :  { %1952 = vrcp.f32 %v1550_v9 }
 0x498   :  { %v1953_v52 = vpop.eup %1952 }
 0x499   :  { %vm1554_vm4 = vcmp.lt.f32.partialorder %v1553_v8, %v1953_v52  ;;  %v1562_v10 = vrot.slane %v1953_v52, %v2833_v50 }
 0x49a   :  { %v1655_v11 = vsel %vm1554_vm4, 1.0, %v2018_v2 }
 0x49b   :  { %v1568_v15 = vrot.slane %v1655_v11, %v2833_v50  ;;  %v1564_v16 = vsel %vm1558_vm3, %v1562_v10, %v1528_v25 }
 0x49c   :  { %1574 = vst.msk [vmem:[#allocation3 + $0x8] sm:$0xff] %vm989_vm0, %v1564_v16 }
 0x49d   :  { %v1570_v55 = vsel %vm1558_vm3, %v1568_v15, %v1534_v17 }
 0x49e   :  { %1965 = shalt.err (!%p1962_p4)
}
 0x49f   :  { %s2022_s23 = smov 128   ;;  %s2023_s24 = smov 8   ;;  %v1572_v50 = vsel %vm995_vm2, %v1568_v15, %v1571_v34  ;;  %1576 = vst.msk [vmem:[#allocation5 + $0x8] sm:$0xff] %vm989_vm0, %v1570_v55 }
 0x4a0   :  { %1589 = dma.vmem_to_hbm [thread:$0]  %s1584_s18, 256, %s3053_s6, [#allocation4], %s2022_s23, %s2022_s23, %s2023_s24   ;;  %1577 = vst.msk [vmem:[#allocation7] sm:$0xff] %vm989_vm0, %v1572_v50 }
 0x4a1   :  { %s1974_s1 = scalar_lea.vmem %s1596_s20, 256  ;;  %p1979_p6 = scmp.lt.s32.totalorder %s1596_s20, %s1596_s20 }
 0x4a2   :  { %p1975_p5 = scmp.ne.s32.totalorder %s1596_s20, %s1974_s1  ;;  %p1980_p7 = scmp.lt.s32.totalorder %s1974_s1, %s1974_s1 }
 0x4a4   :  { %p1981_p8 = por %p1980_p7, %p1979_p6 }
 0x4a6   :  { %p1982_p9 = pnand %p1981_p8, %p1975_p5 }
 0x4a8   :  { %1985 = shalt.err (!%p1982_p9)
}
 0x4a9   :  { %1601 = dma.vmem_to_hbm [thread:$0]  %s1596_s20, 256, %s3054_s7, [#allocation6], %s2022_s23, %s2022_s23, %s2023_s24  }
 0x4aa   :  { %s1994_s6 = scalar_lea.vmem %s3025_s22, 128  ;;  %p1999_p11 = scmp.lt.s32.totalorder %s3025_s22, %s3025_s22 }
 0x4ab   :  { %p1995_p10 = scmp.ne.s32.totalorder %s3025_s22, %s1994_s6  ;;  %p2000_p12 = scmp.lt.s32.totalorder %s1994_s6, %s1994_s6 }
 0x4ad   :  { %p2001_p13 = por %p2000_p12, %p1999_p11 }
 0x4af   :  { %p2002_p0 = pnand %p2001_p13, %p1995_p10 }
 0x4b1   :  { %2005 = shalt.err (!%p2002_p0)
}
 0x4b2   :  { %1611 = dma.vmem_to_hbm [thread:$0]  %s3025_s22, 128, %s3055_s8, [#allocation6]  }
 0x4b3   :  { %2014 = dma.done.wait [#allocation4], 256  }
 0x4b4   :  { %2015 = vsyncadd [#allocation4], 4294967040 }
 0x4b5   :  { %2016 = dma.done.wait [#allocation6], 384  }
 0x4b6   :  { %2017 = vsyncadd [#allocation6], 4294966912 }
 0x4b7   :  { %1621 = vsyncpa [#allocation4], 1 }
 0x4b8   :  { %1622 = vsyncpa [#allocation6], 1 }

</bundles_post_ra>
